<compile_context>
chip_gen: v7x
topology: tpu7x:2x2x1
jax: 0.10.0
libtpu: 0.0.40
codegen_flags: <defaults>
</compile_context>

<pallas_src>
import functools

import jax
import jax.numpy as jnp
from jax import lax
from jax.experimental import pallas as pl
from jax.experimental.pallas import tpu as pltpu

PAD = 128        # lane-dense latent slab width (n_latent + time + rowsq <= 128)
CHUNK = 8        # Euler steps per manual DMA chunk in the ODE kernel


def _round_up(x, m):
    return ((x + m - 1) // m) * m


def _elu(x):
    return jnp.where(x > 0, x, jnp.exp(jnp.minimum(x, 0.0)) - 1.0)


def _pick_tm(n_rows, n_feat_p, hv_p):
    """Row tile: biggest that keeps the fused pass ~<=24 MiB of VMEM, with
    minimal row padding (safe on v7x's 64 MiB physical VMEM)."""
    per_row = 8 * n_feat_p + 16 * n_feat_p + 8 * hv_p + 4 * PAD * 4
    budget = 24 * 1024 * 1024
    cap = max(128, min(1024, (budget // per_row) // 8 * 8))
    n8 = _round_up(max(n_rows, 8), 8)
    if n8 <= cap:
        return n8
    best_tm, best_key = 128, None
    for tm in (1024, 512, 256, 128):
        if tm > cap:
            continue
        key = (_round_up(n_rows, tm) - n_rows, -tm)
        if best_key is None or key < best_key:
            best_key, best_tm = key, tm
    return best_tm


# ---------------------------------------------------------------------------
# Fused dense pass: encoder (+ time head) + decoder + per-row recon sq-error,
# applied to an s-tile and a u-tile per grid step.  Output slab per row:
#   lanes [0, L)  : latent z
#   lane  L       : sigmoid pseudotime
#   lane  L+1     : sum_j (x_j - pred_x_j)^2
#   other lanes   : 0
# ---------------------------------------------------------------------------
def _fused_vae_kernel(s_ref, u_ref, ew1_ref, eb1_ref, ew2_ref, eb2_ref,
                      dw1_ref, db1_ref, dw2_ref, db2_ref,
                      os_ref, ou_ref, *, n_latent):
    ew1 = ew1_ref[...]
    eb1 = eb1_ref[...]
    ew2 = ew2_ref[...]
    eb2 = eb2_ref[...]
    dw1 = dw1_ref[...]
    db1 = db1_ref[...]
    dw2 = dw2_ref[...]
    db2 = db2_ref[...]

    def run(x_ref, o_ref):
        x = x_ref[...]                                           # bf16 tile
        h = _elu(jnp.dot(x, ew1, preferred_element_type=jnp.float32) + eb1)
        y = jnp.dot(h.astype(jnp.bfloat16), ew2,
                    preferred_element_type=jnp.float32) + eb2    # (tm, 128)
        lane = lax.broadcasted_iota(jnp.int32, y.shape, 1)
        z = jnp.where(lane < n_latent, y, 0.0)                   # latent lanes
        # decoder (padded weight rows >= n_latent are zero)
        hd = _elu(jnp.dot(z.astype(jnp.bfloat16), dw1,
                          preferred_element_type=jnp.float32) + db1)
        pred = jnp.dot(hd.astype(jnp.bfloat16), dw2,
                       preferred_element_type=jnp.float32) + db2
        d = x.astype(jnp.float32) - pred                         # padded cols -> 0
        rowsq = jnp.sum(d * d, axis=-1, keepdims=True)           # (tm, 1)
        t_col = jnp.where(lane == n_latent, jax.nn.sigmoid(y), 0.0)
        sq_col = jnp.where(lane == n_latent + 1, rowsq, 0.0)
        o_ref[...] = z + t_col + sq_col

    run(s_ref, os_ref)
    run(u_ref, ou_ref)


def fused_vae_forward(s_p, u_p, ew1, eb1, ew2, eb2, dw1, db1, dw2, db2,
                      n_latent, tm):
    rows_p, n_int_p = s_p.shape
    hv_p = ew1.shape[1]
    return pl.pallas_call(
        functools.partial(_fused_vae_kernel, n_latent=n_latent),
        out_shape=(jax.ShapeDtypeStruct((rows_p, PAD), jnp.float32),
                   jax.ShapeDtypeStruct((rows_p, PAD), jnp.float32)),
        grid=(rows_p // tm,),
        in_specs=[
            pl.BlockSpec((tm, n_int_p), lambda i: (i, 0)),        # s tile (bf16)
            pl.BlockSpec((tm, n_int_p), lambda i: (i, 0)),        # u tile (bf16)
            pl.BlockSpec((n_int_p, hv_p), lambda i: (0, 0)),      # enc W1
            pl.BlockSpec((1, hv_p), lambda i: (0, 0)),            # enc b1
            pl.BlockSpec((hv_p, PAD), lambda i: (0, 0)),          # enc [W2|w3|0]
            pl.BlockSpec((1, PAD), lambda i: (0, 0)),             # enc [b2|b3|0]
            pl.BlockSpec((PAD, hv_p), lambda i: (0, 0)),          # dec W1 (padded)
            pl.BlockSpec((1, hv_p), lambda i: (0, 0)),            # dec b1
            pl.BlockSpec((hv_p, n_int_p), lambda i: (0, 0)),      # dec W2
            pl.BlockSpec((1, n_int_p), lambda i: (0, 0)),         # dec b2
        ],
        out_specs=(pl.BlockSpec((tm, PAD), lambda i: (i, 0)),
                   pl.BlockSpec((tm, PAD), lambda i: (i, 0))),
        compiler_params=pltpu.CompilerParams(
            dimension_semantics=("parallel",),
            vmem_limit_bytes=48 * 1024 * 1024),
    )(s_p, u_p, ew1, eb1, ew2, eb2, dw1, db1, dw2, db2)


# ---------------------------------------------------------------------------
# Per-sample latent-ODE Euler integration + ODE-loss partial sums.
# grid=(n_sample,), per-sample weights on a leading axis, group offsets /
# lengths / per-row dt scalar-prefetched into SMEM.  The grouped velocity
# slab v_g stays in HBM (pl.ANY) and is streamed per group in CHUNK-row
# double-buffered manual DMAs.
# ---------------------------------------------------------------------------
def _ode_kernel(off_ref, cnt_ref, dt_ref, z0_ref, w1t_ref, b1_ref, w2_ref,
                b2_ref, v_hbm, o_ref, vbuf, sem):
    i = pl.program_id(0)
    off = off_ref[i]
    cnt = cnt_ref[i]
    w1t = w1t_ref[0]            # (Ho, 128)  == torch fc1.weight, lane-padded
    b1 = b1_ref[0]              # (Ho, 1)
    w2 = w2_ref[0]              # (Ho, 128)  == torch fc2.weight.T, lane-padded
    b2 = b2_ref[0]              # (1, 128)

    n_chunks = pl.cdiv(cnt, CHUNK)

    def copy_for(c, slot):
        return pltpu.make_async_copy(
            v_hbm.at[pl.ds(off + c * CHUNK, CHUNK)],
            vbuf.at[pl.ds(slot * CHUNK, CHUNK)],
            sem.at[slot])

    @pl.when(n_chunks > 0)
    def _():
        copy_for(0, 0).start()

    def drift(z):               # z: (1,128); VPU broadcast-mul + XLU reduces
        h = jnp.sum(w1t * z, axis=1, keepdims=True) + b1      # (Ho, 1)
        h = _elu(h)
        return jnp.sum(h * w2, axis=0, keepdims=True) + b2    # (1, 128)

    def chunk_body(c, carry):
        z, acc = carry
        slot = c % 2
        copy_for(c, slot).wait()

        @pl.when(c + 1 < n_chunks)
        def _():
            copy_for(c + 1, 1 - slot).start()

        for k in range(CHUNK):                  # static unroll for ILP
            t = c * CHUNK + k
            live = t < cnt
            fz = drift(z)                       # f(pred_z[t])
            vrow = vbuf[pl.ds(slot * CHUNK + k, 1), :]
            d = fz - vrow
            acc = acc + jnp.where(live, d * d, 0.0)
            dt = jnp.where(live, dt_ref[off + t], 0.0)
            z = z + dt * fz                     # Euler (dt==0 on last row)
        return z, acc

    z0 = z0_ref[0]                              # (1, 128)
    acc0 = jnp.zeros((1, PAD), jnp.float32)
    _, acc = lax.fori_loop(0, n_chunks, chunk_body, (z0, acc0))
    o_ref[...] = jnp.broadcast_to(acc, o_ref.shape)


def ode_forward(offsets, counts, dt_g, z0, w1t, b1c, w2p, b2r, v_g):
    s_n, ho, _ = w1t.shape
    return pl.pallas_call(
        _ode_kernel,
        out_shape=jax.ShapeDtypeStruct((s_n * 8, PAD), jnp.float32),
        grid_spec=pltpu.PrefetchScalarGridSpec(
            num_scalar_prefetch=3,              # offsets, counts, dt -> SMEM
            grid=(s_n,),
            in_specs=[
                pl.BlockSpec((1, 1, PAD), lambda i, *_: (i, 0, 0)),   # z0
                pl.BlockSpec((1, ho, PAD), lambda i, *_: (i, 0, 0)),  # fc1.W
                pl.BlockSpec((1, ho, 1), lambda i, *_: (i, 0, 0)),    # fc1.b
                pl.BlockSpec((1, ho, PAD), lambda i, *_: (i, 0, 0)),  # fc2.W
                pl.BlockSpec((1, 1, PAD), lambda i, *_: (i, 0, 0)),   # fc2.b
                pl.BlockSpec(memory_space=pl.ANY),                    # v_g (HBM)
            ],
            out_specs=pl.BlockSpec((8, PAD), lambda i, *_: (i, 0)),
            scratch_shapes=[
                pltpu.VMEM((2 * CHUNK, PAD), jnp.float32),            # v chunks
                pltpu.SemaphoreType.DMA((2,)),
            ]),
        compiler_params=pltpu.CompilerParams(
            dimension_semantics=("parallel",)),   # samples are independent
    )(offsets, counts, dt_g, z0, w1t, b1c, w2p, b2r, v_g)


# --------------------------- parameter init ----------------------------------
def init_params(key, n_int, n_latent, n_sample, n_ode_hidden, n_vae_hidden,
                same_ode=False):
    ks = jax.random.split(key, 7 + n_sample)

    def lin(k, fan_in, fan_out):
        kw, kb = jax.random.split(k)
        bound = 1.0 / jnp.sqrt(jnp.float32(fan_in))
        w = jax.random.uniform(kw, (fan_in, fan_out), jnp.float32, -bound, bound)
        b = jax.random.uniform(kb, (1, fan_out), jnp.float32, -bound, bound)
        return w, b

    enc_w1, enc_b1 = lin(ks[0], n_int, n_vae_hidden)
    enc_w2, enc_b2 = lin(ks[1], n_vae_hidden, n_latent)
    enc_w3, enc_b3 = lin(ks[2], n_vae_hidden, 1)
    encoder = dict(w1=enc_w1, b1=enc_b1, w2=enc_w2, b2=enc_b2,
                   w3=enc_w3, b3=enc_b3)

    dec_w1, dec_b1 = lin(ks[3], n_latent, n_vae_hidden)
    dec_w2, dec_b2 = lin(ks[4], n_vae_hidden, n_int)
    decoder = dict(w1=dec_w1, b1=dec_b1, w2=dec_w2, b2=dec_b2)

    ode = []
    for i in range(n_sample):
        k = ks[7] if same_ode else ks[7 + i]
        ka, kb = jax.random.split(k)
        w1, b1 = lin(ka, n_latent, n_ode_hidden)
        w2, b2 = lin(kb, n_ode_hidden, n_latent)
        ode.append(dict(w1=w1, b1=b1, w2=w2, b2=b2))

    beta = jax.random.uniform(ks[5], (n_latent,), jnp.float32)
    lam = jax.random.uniform(ks[6], (n_latent,), jnp.float32)
    return dict(encoder=encoder, decoder=decoder, ode=ode, beta=beta, lam=lam)


# ------------------------------ TNODE.forward --------------------------------
def _tnode_forward(params, s, u, g):
    enc, dec = params["encoder"], params["decoder"]
    L = params["beta"].shape[0]
    S = len(params["ode"])
    N, n_int = s.shape
    assert L + 2 <= PAD

    n_int_p = _round_up(n_int, 128)
    hv = enc["w1"].shape[1]
    hv_p = _round_up(hv, 128)

    # ---- fused encoder + decoder + per-row recon error over s and u tiles ---
    tm = _pick_tm(N, n_int_p, hv_p)
    rows_p = _round_up(N, tm)

    def pad2(a, r, c):
        return jnp.pad(a, ((0, r - a.shape[0]), (0, c - a.shape[1])))

    s_p = pad2(s, rows_p, n_int_p).astype(jnp.bfloat16)
    u_p = pad2(u, rows_p, n_int_p).astype(jnp.bfloat16)

    ew1 = pad2(enc["w1"], n_int_p, hv_p).astype(jnp.bfloat16)
    eb1 = pad2(enc["b1"], 1, hv_p)
    ew2 = jnp.zeros((hv_p, PAD), jnp.float32)
    ew2 = ew2.at[:hv, :L].set(enc["w2"]).at[:hv, L].set(enc["w3"][:, 0])
    ew2 = ew2.astype(jnp.bfloat16)
    eb2 = jnp.zeros((1, PAD), jnp.float32)
    eb2 = eb2.at[0, :L].set(enc["b2"][0]).at[0, L].set(enc["b3"][0, 0])
    dw1 = jnp.zeros((PAD, hv_p), jnp.float32).at[:L, :hv].set(dec["w1"])
    dw1 = dw1.astype(jnp.bfloat16)
    db1 = pad2(dec["b1"], 1, hv_p)
    dw2 = pad2(dec["w2"], hv_p, n_int_p).astype(jnp.bfloat16)
    db2 = pad2(dec["b2"], 1, n_int_p)

    s_out, u_out = fused_vae_forward(s_p, u_p, ew1, eb1, ew2, eb2,
                                     dw1, db1, dw2, db2, L, tm)
    z_s = s_out[:N]                          # (N,128): [z | t | rowsq | 0]
    z_u = u_out[:N]
    Ts = s_out[:N, L]                        # pseudotime of spliced reads
    rowsq_s = s_out[:N, L + 1]
    rowsq_u = u_out[:N, L + 1]

    # ---- sort / dedup / grouping bookkeeping (fixed shapes, jit-able) -------
    order = jnp.argsort(Ts)
    ts_sorted = Ts[order]
    keep = jnp.concatenate([ts_sorted[:-1] != ts_sorted[1:],
                            jnp.array([True])])
    n_valid = jnp.sum(keep).astype(jnp.float32)
    keep_orig = jnp.zeros((N,), jnp.bool_).at[order].set(keep)

    denom = n_valid * n_int
    recon_loss_ec = jnp.sum(jnp.where(keep_orig, rowsq_s, 0.0)) / denom
    recon_loss_ec_u = jnp.sum(jnp.where(keep_orig, rowsq_u, 0.0)) / denom

    g_sorted = g[order].astype(jnp.int32)
    grp = jnp.where(keep, g_sorted, S)                     # dropped -> sentinel
    counts = jnp.sum(grp[:, None] == jnp.arange(S, dtype=jnp.int32)[None, :],
                     axis=0).astype(jnp.int32)
    offsets = (jnp.cumsum(counts) - counts).astype(jnp.int32)
    comp = grp * N + jnp.arange(N, dtype=jnp.int32)        # (group, time) key
    perm = jnp.argsort(comp)
    grp_idx = order[perm]                                  # grouped row order
    grp_g = grp[perm]
    ts_g = Ts[grp_idx]

    # velocity target v = exp(beta)*z_u - exp(lambda)*z_s (pad lanes -> 0)
    eb = jnp.zeros((PAD,), jnp.float32).at[:L].set(jnp.exp(params["beta"]))
    el = jnp.zeros((PAD,), jnp.float32).at[:L].set(jnp.exp(params["lam"]))
    v = eb[None, :] * z_u - el[None, :] * z_s              # (N, 128)
    v_g = v[grp_idx]

    # per-row Euler dt, zeroed at group boundaries / last row of each group
    dt = jnp.where(grp_g[:-1] == grp_g[1:], ts_g[1:] - ts_g[:-1], 0.0)
    dt_g = jnp.concatenate([dt, jnp.zeros((1,), jnp.float32)])

    n_pad_rows = _round_up(N + CHUNK, 8)                   # DMA window safety
    v_g = jnp.pad(v_g, ((0, n_pad_rows - N), (0, 0)))
    dt_g = jnp.pad(dt_g, (0, n_pad_rows - N))

    # per-sample initial latent z0 = first (earliest) kept row of the group
    z0 = z_s[grp_idx[jnp.minimum(offsets, N - 1)]]         # (S, 128)
    z0 = jnp.where(jnp.arange(PAD)[None, :] < L, z0, 0.0)
    z0 = z0.reshape(S, 1, PAD)

    # per-sample ODE weights (stacked, lane-padded)
    ho = params["ode"][0]["w1"].shape[1]
    w1s = jnp.stack([o["w1"] for o in params["ode"]])      # (S, L, Ho)
    b1s = jnp.stack([o["b1"] for o in params["ode"]])      # (S, 1, Ho)
    w2s = jnp.stack([o["w2"] for o in params["ode"]])      # (S, Ho, L)
    b2s = jnp.stack([o["b2"] for o in params["ode"]])      # (S, 1, L)
    w1t = jnp.zeros((S, ho, PAD), jnp.float32).at[:, :, :L].set(
        jnp.transpose(w1s, (0, 2, 1)))
    b1c = jnp.transpose(b1s, (0, 2, 1))                    # (S, Ho, 1)
    w2p = jnp.zeros((S, ho, PAD), jnp.float32).at[:, :, :L].set(w2s)
    b2r = jnp.zeros((S, 1, PAD), jnp.float32).at[:, :, :L].set(b2s)

    ode_raw = ode_forward(offsets, counts, dt_g, z0,
                          w1t, b1c, w2p, b2r, v_g)         # (S*8, 128)
    per_sample = jnp.sum(ode_raw.reshape(S, 8, PAD)[:, 0, :L], axis=-1)
    z_div = jnp.sum(jnp.where(
        counts > 0,
        per_sample / (jnp.maximum(counts, 1) * L).astype(jnp.float32),
        0.0))

    loss = recon_loss_ec + recon_loss_ec_u + z_div
    return loss, recon_loss_ec, recon_loss_ec_u, z_div


tnode_forward = jax.jit(_tnode_forward)


# ---------------------------------- demo --------------------------------------
if __name__ == "__main__":
    n_cells, n_int = 16, 64
    n_latent, n_vae_hidden, n_ode_hidden, n_sample = 8, 32, 32, 2

    key = jax.random.PRNGKey(0)
    kp, ks, ku, kg = jax.random.split(key, 4)
    params = init_params(kp, n_int, n_latent, n_sample,
                         n_ode_hidden, n_vae_hidden, same_ode=False)

    s = jax.random.normal(ks, (n_cells, n_int), jnp.float32)
    u = jax.random.normal(ku, (n_cells, n_int), jnp.float32)
    g = jax.random.randint(kg, (n_cells,), 0, n_sample, jnp.int32)

    loss, recon_s, recon_u, z_div = tnode_forward(params, s, u, g)
    jax.block_until_ready((loss, recon_s, recon_u, z_div))
    print("KERNEL_OK")
</pallas_src>

<mosaic_0001>
module attributes {stable_mosaic.version = 11 : i64} {
  func.func @_fused_vae_kernel(%arg0: i32, %arg1: memref<16x128xbf16, #tpu.memory_space<vmem>>, %arg2: memref<16x128xbf16, #tpu.memory_space<vmem>>, %arg3: memref<128x128xbf16, #tpu.memory_space<vmem>>, %arg4: memref<1x128xf32, #tpu.memory_space<vmem>>, %arg5: memref<128x128xbf16, #tpu.memory_space<vmem>>, %arg6: memref<1x128xf32, #tpu.memory_space<vmem>>, %arg7: memref<128x128xbf16, #tpu.memory_space<vmem>>, %arg8: memref<1x128xf32, #tpu.memory_space<vmem>>, %arg9: memref<128x128xbf16, #tpu.memory_space<vmem>>, %arg10: memref<1x128xf32, #tpu.memory_space<vmem>>, %arg11: memref<16x128xf32, #tpu.memory_space<vmem>>, %arg12: memref<16x128xf32, #tpu.memory_space<vmem>>) attributes {dimension_semantics = [#tpu.dimension_semantics<parallel>], iteration_bounds = array<i64: 1>, scalar_prefetch = 0 : i64, scratch_operands = 0 : i64, tpu.core_type = #tpu.core_type<tc>, window_params = [{transform_indices = @transform_0, window_bounds = array<i64: 16, 128>}, {transform_indices = @transform_1, window_bounds = array<i64: 16, 128>}, {pipeline_mode = #tpu.pipeline_mode<synchronous>, transform_indices = @transform_2, window_bounds = array<i64: 128, 128>}, {pipeline_mode = #tpu.pipeline_mode<synchronous>, transform_indices = @transform_3, window_bounds = array<i64: 1, 128>}, {pipeline_mode = #tpu.pipeline_mode<synchronous>, transform_indices = @transform_4, window_bounds = array<i64: 128, 128>}, {pipeline_mode = #tpu.pipeline_mode<synchronous>, transform_indices = @transform_5, window_bounds = array<i64: 1, 128>}, {pipeline_mode = #tpu.pipeline_mode<synchronous>, transform_indices = @transform_6, window_bounds = array<i64: 128, 128>}, {pipeline_mode = #tpu.pipeline_mode<synchronous>, transform_indices = @transform_7, window_bounds = array<i64: 1, 128>}, {pipeline_mode = #tpu.pipeline_mode<synchronous>, transform_indices = @transform_8, window_bounds = array<i64: 128, 128>}, {pipeline_mode = #tpu.pipeline_mode<synchronous>, transform_indices = @transform_9, window_bounds = array<i64: 1, 128>}, {transform_indices = @transform_10, window_bounds = array<i64: 16, 128>}, {transform_indices = @transform_11, window_bounds = array<i64: 16, 128>}]} {
    %c0 = arith.constant 0 : index
    %c0_0 = arith.constant 0 : index
    %0 = vector.load %arg3[%c0, %c0_0] : memref<128x128xbf16, #tpu.memory_space<vmem>>, vector<128x128xbf16>
    %c0_1 = arith.constant 0 : index
    %c0_2 = arith.constant 0 : index
    %1 = vector.load %arg4[%c0_1, %c0_2] : memref<1x128xf32, #tpu.memory_space<vmem>>, vector<1x128xf32>
    %c0_3 = arith.constant 0 : index
    %c0_4 = arith.constant 0 : index
    %2 = vector.load %arg5[%c0_3, %c0_4] : memref<128x128xbf16, #tpu.memory_space<vmem>>, vector<128x128xbf16>
    %c0_5 = arith.constant 0 : index
    %c0_6 = arith.constant 0 : index
    %3 = vector.load %arg6[%c0_5, %c0_6] : memref<1x128xf32, #tpu.memory_space<vmem>>, vector<1x128xf32>
    %c0_7 = arith.constant 0 : index
    %c0_8 = arith.constant 0 : index
    %4 = vector.load %arg7[%c0_7, %c0_8] : memref<128x128xbf16, #tpu.memory_space<vmem>>, vector<128x128xbf16>
    %c0_9 = arith.constant 0 : index
    %c0_10 = arith.constant 0 : index
    %5 = vector.load %arg8[%c0_9, %c0_10] : memref<1x128xf32, #tpu.memory_space<vmem>>, vector<1x128xf32>
    %c0_11 = arith.constant 0 : index
    %c0_12 = arith.constant 0 : index
    %6 = vector.load %arg9[%c0_11, %c0_12] : memref<128x128xbf16, #tpu.memory_space<vmem>>, vector<128x128xbf16>
    %c0_13 = arith.constant 0 : index
    %c0_14 = arith.constant 0 : index
    %7 = vector.load %arg10[%c0_13, %c0_14] : memref<1x128xf32, #tpu.memory_space<vmem>>, vector<1x128xf32>
    %c0_15 = arith.constant 0 : index
    %c0_16 = arith.constant 0 : index
    %8 = vector.load %arg1[%c0_15, %c0_16] : memref<16x128xbf16, #tpu.memory_space<vmem>>, vector<16x128xbf16>
    %cst = arith.constant dense<0.000000e+00> : vector<16x128xf32>
    %9 = tpu.matmul %8, %0, %cst {dimension_numbers = #tpu.dot_dimension_numbers<[1], [0], [0], [1], [0, 0, 1, 1], [], []>} : vector<16x128xbf16>, vector<128x128xbf16>, vector<16x128xf32> -> vector<16x128xf32>
    %10 = vector.broadcast %1 : vector<1x128xf32> to vector<16x128xf32>
    %11 = arith.addf %9, %10 : vector<16x128xf32>
    %cst_17 = arith.constant 0.000000e+00 : f32
    %12 = vector.broadcast %cst_17 : f32 to vector<16x128xf32>
    %13 = arith.cmpf ogt, %11, %12 : vector<16x128xf32>
    %cst_18 = arith.constant 0.000000e+00 : f32
    %14 = vector.broadcast %cst_18 : f32 to vector<16x128xf32>
    %15 = arith.minimumf %11, %14 : vector<16x128xf32>
    %16 = math.exp %15 : vector<16x128xf32>
    %cst_19 = arith.constant 1.000000e+00 : f32
    %17 = vector.broadcast %cst_19 : f32 to vector<16x128xf32>
    %18 = arith.subf %16, %17 : vector<16x128xf32>
    %19 = arith.select %13, %11, %18 : vector<16x128xi1>, vector<16x128xf32>
    %20 = arith.truncf %19 : vector<16x128xf32> to vector<16x128xbf16>
    %cst_20 = arith.constant dense<0.000000e+00> : vector<16x128xf32>
    %21 = tpu.matmul %20, %2, %cst_20 {dimension_numbers = #tpu.dot_dimension_numbers<[1], [0], [0], [1], [0, 0, 1, 1], [], []>} : vector<16x128xbf16>, vector<128x128xbf16>, vector<16x128xf32> -> vector<16x128xf32>
    %22 = vector.broadcast %3 : vector<1x128xf32> to vector<16x128xf32>
    %23 = arith.addf %21, %22 : vector<16x128xf32>
    %24 = tpu.iota {dimensions = array<i32: 1>} : vector<16x128xi32>
    %c8_i32 = arith.constant 8 : i32
    %25 = vector.broadcast %c8_i32 : i32 to vector<16x128xi32>
    %26 = arith.cmpi slt, %24, %25 : vector<16x128xi32>
    %cst_21 = arith.constant 0.000000e+00 : f32
    %27 = vector.broadcast %cst_21 : f32 to vector<16x128xf32>
    %28 = arith.select %26, %23, %27 : vector<16x128xi1>, vector<16x128xf32>
    %29 = arith.truncf %28 : vector<16x128xf32> to vector<16x128xbf16>
    %cst_22 = arith.constant dense<0.000000e+00> : vector<16x128xf32>
    %30 = tpu.matmul %29, %4, %cst_22 {dimension_numbers = #tpu.dot_dimension_numbers<[1], [0], [0], [1], [0, 0, 1, 1], [], []>} : vector<16x128xbf16>, vector<128x128xbf16>, vector<16x128xf32> -> vector<16x128xf32>
    %31 = vector.broadcast %5 : vector<1x128xf32> to vector<16x128xf32>
    %32 = arith.addf %30, %31 : vector<16x128xf32>
    %cst_23 = arith.constant 0.000000e+00 : f32
    %33 = vector.broadcast %cst_23 : f32 to vector<16x128xf32>
    %34 = arith.cmpf ogt, %32, %33 : vector<16x128xf32>
    %cst_24 = arith.constant 0.000000e+00 : f32
    %35 = vector.broadcast %cst_24 : f32 to vector<16x128xf32>
    %36 = arith.minimumf %32, %35 : vector<16x128xf32>
    %37 = math.exp %36 : vector<16x128xf32>
    %cst_25 = arith.constant 1.000000e+00 : f32
    %38 = vector.broadcast %cst_25 : f32 to vector<16x128xf32>
    %39 = arith.subf %37, %38 : vector<16x128xf32>
    %40 = arith.select %34, %32, %39 : vector<16x128xi1>, vector<16x128xf32>
    %41 = arith.truncf %40 : vector<16x128xf32> to vector<16x128xbf16>
    %cst_26 = arith.constant dense<0.000000e+00> : vector<16x128xf32>
    %42 = tpu.matmul %41, %6, %cst_26 {dimension_numbers = #tpu.dot_dimension_numbers<[1], [0], [0], [1], [0, 0, 1, 1], [], []>} : vector<16x128xbf16>, vector<128x128xbf16>, vector<16x128xf32> -> vector<16x128xf32>
    %43 = vector.broadcast %7 : vector<1x128xf32> to vector<16x128xf32>
    %44 = arith.addf %42, %43 : vector<16x128xf32>
    %45 = arith.extf %8 : vector<16x128xbf16> to vector<16x128xf32>
    %46 = arith.subf %45, %44 : vector<16x128xf32>
    %47 = arith.mulf %46, %46 : vector<16x128xf32>
    %cst_27 = arith.constant dense<0.000000e+00> : vector<16xf32>
    %48 = vector.multi_reduction <add>, %47, %cst_27 [1] : vector<16x128xf32> to vector<16xf32>
    %49 = vector.shape_cast %48 : vector<16xf32> to vector<16x1xf32>
    %c8_i32_28 = arith.constant 8 : i32
    %50 = vector.broadcast %c8_i32_28 : i32 to vector<16x128xi32>
    %51 = arith.cmpi eq, %24, %50 : vector<16x128xi32>
    %52 = arith.negf %23 : vector<16x128xf32>
    %53 = math.exp %52 : vector<16x128xf32>
    %cst_29 = arith.constant 1.000000e+00 : f32
    %54 = vector.broadcast %cst_29 : f32 to vector<16x128xf32>
    %55 = arith.addf %54, %53 : vector<16x128xf32>
    %56 = arith.divf %54, %55 : vector<16x128xf32>
    %cst_30 = arith.constant 0.000000e+00 : f32
    %57 = vector.broadcast %cst_30 : f32 to vector<16x128xf32>
    %58 = arith.select %51, %56, %57 : vector<16x128xi1>, vector<16x128xf32>
    %c9_i32 = arith.constant 9 : i32
    %59 = vector.broadcast %c9_i32 : i32 to vector<16x128xi32>
    %60 = arith.cmpi eq, %24, %59 : vector<16x128xi32>
    %cst_31 = arith.constant 0.000000e+00 : f32
    %61 = vector.shape_cast %49 : vector<16x1xf32> to vector<16x1xf32>
    %62 = vector.broadcast %61 : vector<16x1xf32> to vector<16x128xf32>
    %63 = vector.broadcast %cst_31 : f32 to vector<16x128xf32>
    %64 = arith.select %60, %62, %63 : vector<16x128xi1>, vector<16x128xf32>
    %65 = arith.addf %28, %58 : vector<16x128xf32>
    %66 = arith.addf %65, %64 : vector<16x128xf32>
    %c0_32 = arith.constant 0 : index
    %c0_33 = arith.constant 0 : index
    %67 = vector.load %arg11[%c0_32, %c0_33] : memref<16x128xf32, #tpu.memory_space<vmem>>, vector<16x128xf32>
    tpu.vector_store %arg11[%c0_32, %c0_33], %66 {strides = array<i32>} : memref<16x128xf32, #tpu.memory_space<vmem>>, vector<16x128xf32>,
    %c0_34 = arith.constant 0 : index
    %c0_35 = arith.constant 0 : index
    %68 = vector.load %arg2[%c0_34, %c0_35] : memref<16x128xbf16, #tpu.memory_space<vmem>>, vector<16x128xbf16>
    %cst_36 = arith.constant dense<0.000000e+00> : vector<16x128xf32>
    %69 = tpu.matmul %68, %0, %cst_36 {dimension_numbers = #tpu.dot_dimension_numbers<[1], [0], [0], [1], [0, 0, 1, 1], [], []>} : vector<16x128xbf16>, vector<128x128xbf16>, vector<16x128xf32> -> vector<16x128xf32>
    %70 = vector.broadcast %1 : vector<1x128xf32> to vector<16x128xf32>
    %71 = arith.addf %69, %70 : vector<16x128xf32>
    %cst_37 = arith.constant 0.000000e+00 : f32
    %72 = vector.broadcast %cst_37 : f32 to vector<16x128xf32>
    %73 = arith.cmpf ogt, %71, %72 : vector<16x128xf32>
    %cst_38 = arith.constant 0.000000e+00 : f32
    %74 = vector.broadcast %cst_38 : f32 to vector<16x128xf32>
    %75 = arith.minimumf %71, %74 : vector<16x128xf32>
    %76 = math.exp %75 : vector<16x128xf32>
    %cst_39 = arith.constant 1.000000e+00 : f32
    %77 = vector.broadcast %cst_39 : f32 to vector<16x128xf32>
    %78 = arith.subf %76, %77 : vector<16x128xf32>
    %79 = arith.select %73, %71, %78 : vector<16x128xi1>, vector<16x128xf32>
    %80 = arith.truncf %79 : vector<16x128xf32> to vector<16x128xbf16>
    %cst_40 = arith.constant dense<0.000000e+00> : vector<16x128xf32>
    %81 = tpu.matmul %80, %2, %cst_40 {dimension_numbers = #tpu.dot_dimension_numbers<[1], [0], [0], [1], [0, 0, 1, 1], [], []>} : vector<16x128xbf16>, vector<128x128xbf16>, vector<16x128xf32> -> vector<16x128xf32>
    %82 = vector.broadcast %3 : vector<1x128xf32> to vector<16x128xf32>
    %83 = arith.addf %81, %82 : vector<16x128xf32>
    %84 = tpu.iota {dimensions = array<i32: 1>} : vector<16x128xi32>
    %c8_i32_41 = arith.constant 8 : i32
    %85 = vector.broadcast %c8_i32_41 : i32 to vector<16x128xi32>
    %86 = arith.cmpi slt, %84, %85 : vector<16x128xi32>
    %cst_42 = arith.constant 0.000000e+00 : f32
    %87 = vector.broadcast %cst_42 : f32 to vector<16x128xf32>
    %88 = arith.select %86, %83, %87 : vector<16x128xi1>, vector<16x128xf32>
    %89 = arith.truncf %88 : vector<16x128xf32> to vector<16x128xbf16>
    %cst_43 = arith.constant dense<0.000000e+00> : vector<16x128xf32>
    %90 = tpu.matmul %89, %4, %cst_43 {dimension_numbers = #tpu.dot_dimension_numbers<[1], [0], [0], [1], [0, 0, 1, 1], [], []>} : vector<16x128xbf16>, vector<128x128xbf16>, vector<16x128xf32> -> vector<16x128xf32>
    %91 = vector.broadcast %5 : vector<1x128xf32> to vector<16x128xf32>
    %92 = arith.addf %90, %91 : vector<16x128xf32>
    %cst_44 = arith.constant 0.000000e+00 : f32
    %93 = vector.broadcast %cst_44 : f32 to vector<16x128xf32>
    %94 = arith.cmpf ogt, %92, %93 : vector<16x128xf32>
    %cst_45 = arith.constant 0.000000e+00 : f32
    %95 = vector.broadcast %cst_45 : f32 to vector<16x128xf32>
    %96 = arith.minimumf %92, %95 : vector<16x128xf32>
    %97 = math.exp %96 : vector<16x128xf32>
    %cst_46 = arith.constant 1.000000e+00 : f32
    %98 = vector.broadcast %cst_46 : f32 to vector<16x128xf32>
    %99 = arith.subf %97, %98 : vector<16x128xf32>
    %100 = arith.select %94, %92, %99 : vector<16x128xi1>, vector<16x128xf32>
    %101 = arith.truncf %100 : vector<16x128xf32> to vector<16x128xbf16>
    %cst_47 = arith.constant dense<0.000000e+00> : vector<16x128xf32>
    %102 = tpu.matmul %101, %6, %cst_47 {dimension_numbers = #tpu.dot_dimension_numbers<[1], [0], [0], [1], [0, 0, 1, 1], [], []>} : vector<16x128xbf16>, vector<128x128xbf16>, vector<16x128xf32> -> vector<16x128xf32>
    %103 = vector.broadcast %7 : vector<1x128xf32> to vector<16x128xf32>
    %104 = arith.addf %102, %103 : vector<16x128xf32>
    %105 = arith.extf %68 : vector<16x128xbf16> to vector<16x128xf32>
    %106 = arith.subf %105, %104 : vector<16x128xf32>
    %107 = arith.mulf %106, %106 : vector<16x128xf32>
    %cst_48 = arith.constant dense<0.000000e+00> : vector<16xf32>
    %108 = vector.multi_reduction <add>, %107, %cst_48 [1] : vector<16x128xf32> to vector<16xf32>
    %109 = vector.shape_cast %108 : vector<16xf32> to vector<16x1xf32>
    %c8_i32_49 = arith.constant 8 : i32
    %110 = vector.broadcast %c8_i32_49 : i32 to vector<16x128xi32>
    %111 = arith.cmpi eq, %84, %110 : vector<16x128xi32>
    %112 = arith.negf %83 : vector<16x128xf32>
    %113 = math.exp %112 : vector<16x128xf32>
    %cst_50 = arith.constant 1.000000e+00 : f32
    %114 = vector.broadcast %cst_50 : f32 to vector<16x128xf32>
    %115 = arith.addf %114, %113 : vector<16x128xf32>
    %116 = arith.divf %114, %115 : vector<16x128xf32>
    %cst_51 = arith.constant 0.000000e+00 : f32
    %117 = vector.broadcast %cst_51 : f32 to vector<16x128xf32>
    %118 = arith.select %111, %116, %117 : vector<16x128xi1>, vector<16x128xf32>
    %c9_i32_52 = arith.constant 9 : i32
    %119 = vector.broadcast %c9_i32_52 : i32 to vector<16x128xi32>
    %120 = arith.cmpi eq, %84, %119 : vector<16x128xi32>
    %cst_53 = arith.constant 0.000000e+00 : f32
    %121 = vector.shape_cast %109 : vector<16x1xf32> to vector<16x1xf32>
    %122 = vector.broadcast %121 : vector<16x1xf32> to vector<16x128xf32>
    %123 = vector.broadcast %cst_53 : f32 to vector<16x128xf32>
    %124 = arith.select %120, %122, %123 : vector<16x128xi1>, vector<16x128xf32>
    %125 = arith.addf %88, %118 : vector<16x128xf32>
    %126 = arith.addf %125, %124 : vector<16x128xf32>
    %c0_54 = arith.constant 0 : index
    %c0_55 = arith.constant 0 : index
    %127 = vector.load %arg12[%c0_54, %c0_55] : memref<16x128xf32, #tpu.memory_space<vmem>>, vector<16x128xf32>
    tpu.vector_store %arg12[%c0_54, %c0_55], %126 {strides = array<i32>} : memref<16x128xf32, #tpu.memory_space<vmem>>, vector<16x128xf32>,
    return
  }
  func.func @transform_0(%arg0: i32) -> (i32, i32) {
    %c0_i32 = arith.constant 0 : i32
    %c0_i32_0 = arith.constant 0 : i32
    return %arg0, %c0_i32 : i32, i32
  }
  func.func @transform_1(%arg0: i32) -> (i32, i32) {
    %c0_i32 = arith.constant 0 : i32
    %c0_i32_0 = arith.constant 0 : i32
    return %arg0, %c0_i32 : i32, i32
  }
  func.func @transform_2(%arg0: i32) -> (i32, i32) {
    %c0_i32 = arith.constant 0 : i32
    %c0_i32_0 = arith.constant 0 : i32
    %c0_i32_1 = arith.constant 0 : i32
    return %c0_i32, %c0_i32_0 : i32, i32
  }
  func.func @transform_3(%arg0: i32) -> (i32, i32) {
    %c0_i32 = arith.constant 0 : i32
    %c0_i32_0 = arith.constant 0 : i32
    %c0_i32_1 = arith.constant 0 : i32
    return %c0_i32, %c0_i32_0 : i32, i32
  }
  func.func @transform_4(%arg0: i32) -> (i32, i32) {
    %c0_i32 = arith.constant 0 : i32
    %c0_i32_0 = arith.constant 0 : i32
    %c0_i32_1 = arith.constant 0 : i32
    return %c0_i32, %c0_i32_0 : i32, i32
  }
  func.func @transform_5(%arg0: i32) -> (i32, i32) {
    %c0_i32 = arith.constant 0 : i32
    %c0_i32_0 = arith.constant 0 : i32
    %c0_i32_1 = arith.constant 0 : i32
    return %c0_i32, %c0_i32_0 : i32, i32
  }
  func.func @transform_6(%arg0: i32) -> (i32, i32) {
    %c0_i32 = arith.constant 0 : i32
    %c0_i32_0 = arith.constant 0 : i32
    %c0_i32_1 = arith.constant 0 : i32
    return %c0_i32, %c0_i32_0 : i32, i32
  }
  func.func @transform_7(%arg0: i32) -> (i32, i32) {
    %c0_i32 = arith.constant 0 : i32
    %c0_i32_0 = arith.constant 0 : i32
    %c0_i32_1 = arith.constant 0 : i32
    return %c0_i32, %c0_i32_0 : i32, i32
  }
  func.func @transform_8(%arg0: i32) -> (i32, i32) {
    %c0_i32 = arith.constant 0 : i32
    %c0_i32_0 = arith.constant 0 : i32
    %c0_i32_1 = arith.constant 0 : i32
    return %c0_i32, %c0_i32_0 : i32, i32
  }
  func.func @transform_9(%arg0: i32) -> (i32, i32) {
    %c0_i32 = arith.constant 0 : i32
    %c0_i32_0 = arith.constant 0 : i32
    %c0_i32_1 = arith.constant 0 : i32
    return %c0_i32, %c0_i32_0 : i32, i32
  }
  func.func @transform_10(%arg0: i32) -> (i32, i32) {
    %c0_i32 = arith.constant 0 : i32
    %c0_i32_0 = arith.constant 0 : i32
    return %arg0, %c0_i32 : i32, i32
  }
  func.func @transform_11(%arg0: i32) -> (i32, i32) {
    %c0_i32 = arith.constant 0 : i32
    %c0_i32_0 = arith.constant 0 : i32
    return %arg0, %c0_i32 : i32, i32
  }
}

module attributes {stable_mosaic.version = 11 : i64} {
  func.func @_ode_kernel(%arg0: i32, %arg1: memref<2xi32, #tpu.memory_space<smem>>, %arg2: memref<2xi32, #tpu.memory_space<smem>>, %arg3: memref<24xf32, #tpu.memory_space<smem>>, %arg4: memref<1x1x128xf32, #tpu.memory_space<vmem>>, %arg5: memref<1x32x128xf32, #tpu.memory_space<vmem>>, %arg6: memref<1x32x1xf32, #tpu.memory_space<vmem>>, %arg7: memref<1x32x128xf32, #tpu.memory_space<vmem>>, %arg8: memref<1x1x128xf32, #tpu.memory_space<vmem>>, %arg9: memref<24x128xf32, #tpu.memory_space<any>>, %arg10: memref<8x128xf32, #tpu.memory_space<vmem>>, %arg11: memref<16x128xf32, #tpu.memory_space<vmem>>, %arg12: memref<2x!tpu.dma_semaphore, #tpu.memory_space<semaphore_mem>>) attributes {dimension_semantics = [#tpu.dimension_semantics<parallel>], iteration_bounds = array<i64: 2>, scalar_prefetch = 3 : i64, scratch_operands = 2 : i64, tpu.core_type = #tpu.core_type<tc>, window_params = [{transform_indices = @transform_0, window_bounds = array<i64: 1, 1, 128>}, {transform_indices = @transform_1, window_bounds = array<i64: 1, 32, 128>}, {transform_indices = @transform_2, window_bounds = array<i64: 1, 32, 1>}, {transform_indices = @transform_3, window_bounds = array<i64: 1, 32, 128>}, {transform_indices = @transform_4, window_bounds = array<i64: 1, 1, 128>}, {}, {transform_indices = @transform_6, window_bounds = array<i64: 8, 128>}]} {
    %0 = arith.index_cast %arg0 : i32 to index
    %1 = memref.load %arg1[%0] : memref<2xi32, #tpu.memory_space<smem>>
    %2 = arith.index_cast %arg0 : i32 to index
    %3 = memref.load %arg2[%2] : memref<2xi32, #tpu.memory_space<smem>>
    %c0 = arith.constant 0 : index
    %c0_0 = arith.constant 0 : index
    %c0_1 = arith.constant 0 : index
    %4 = vector.load %arg5[%c0, %c0_0, %c0_1] : memref<1x32x128xf32, #tpu.memory_space<vmem>>, vector<1x32x128xf32>
    %5 = vector.shape_cast %4 : vector<1x32x128xf32> to vector<32x128xf32>
    %c0_2 = arith.constant 0 : index
    %c0_3 = arith.constant 0 : index
    %c0_4 = arith.constant 0 : index
    %6 = vector.load %arg6[%c0_2, %c0_3, %c0_4] : memref<1x32x1xf32, #tpu.memory_space<vmem>>, vector<1x32x1xf32>
    %7 = vector.shape_cast %6 : vector<1x32x1xf32> to vector<32x1xf32>
    %c0_5 = arith.constant 0 : index
    %c0_6 = arith.constant 0 : index
    %c0_7 = arith.constant 0 : index
    %8 = vector.load %arg7[%c0_5, %c0_6, %c0_7] : memref<1x32x128xf32, #tpu.memory_space<vmem>>, vector<1x32x128xf32>
    %9 = vector.shape_cast %8 : vector<1x32x128xf32> to vector<32x128xf32>
    %c0_8 = arith.constant 0 : index
    %c0_9 = arith.constant 0 : index
    %c0_10 = arith.constant 0 : index
    %10 = vector.load %arg8[%c0_8, %c0_9, %c0_10] : memref<1x1x128xf32, #tpu.memory_space<vmem>>, vector<1x1x128xf32>
    %11 = vector.shape_cast %10 : vector<1x1x128xf32> to vector<1x128xf32>
    %c7_i32 = arith.constant 7 : i32
    %12 = arith.addi %3, %c7_i32 : i32
    %c8_i32 = arith.constant 8 : i32
    %13 = arith.divsi %12, %c8_i32 : i32
    %c0_i32 = arith.constant 0 : i32
    %14 = arith.cmpi sgt, %13, %c0_i32 : i32
    %15 = arith.extui %14 : i1 to i32
    %c0_i32_11 = arith.constant 0 : i32
    %16 = arith.cmpi ne, %15, %c0_i32_11 : i32
    scf.if %16 {
      %c0_i32_18 = arith.constant 0 : i32
      %26 = arith.addi %1, %c0_i32_18 : i32
      %c0_i32_19 = arith.constant 0 : i32
      %c0_i32_20 = arith.constant 0 : i32
      %27 = tpu.memref_slice %arg9[%26, %c0_i32_20] : memref<24x128xf32, #tpu.memory_space<any>> -> memref<8x128xf32, #tpu.memory_space<any>>
      %c0_i32_21 = arith.constant 0 : i32
      %c0_i32_22 = arith.constant 0 : i32
      %28 = tpu.memref_slice %arg11[%c0_i32_21, %c0_i32_22] : memref<16x128xf32, #tpu.memory_space<vmem>> -> memref<8x128xf32, #tpu.memory_space<vmem>>
      %29 = tpu.memref_slice %arg12[%c0_i32_19] : memref<2x!tpu.dma_semaphore, #tpu.memory_space<semaphore_mem>> -> memref<1x!tpu.dma_semaphore, #tpu.memory_space<semaphore_mem>>
      %30 = tpu.memref_squeeze %29 : memref<1x!tpu.dma_semaphore, #tpu.memory_space<semaphore_mem>> -> memref<!tpu.dma_semaphore, #tpu.memory_space<semaphore_mem>>
      tpu.enqueue_dma source(%27 : memref<8x128xf32, #tpu.memory_space<any>>) target(%28 : memref<8x128xf32, #tpu.memory_space<vmem>>) target_semaphore(%30 : memref<!tpu.dma_semaphore, #tpu.memory_space<semaphore_mem>>)
    } else {
    }
    %c0_12 = arith.constant 0 : index
    %c0_13 = arith.constant 0 : index
    %c0_14 = arith.constant 0 : index
    %17 = vector.load %arg4[%c0_12, %c0_13, %c0_14] : memref<1x1x128xf32, #tpu.memory_space<vmem>>, vector<1x1x128xf32>
    %18 = vector.shape_cast %17 : vector<1x1x128xf32> to vector<1x128xf32>
    %cst = arith.constant 0.000000e+00 : f32
    %19 = vector.broadcast %cst : f32 to vector<1x128xf32>
    %c0_i32_15 = arith.constant 0 : i32
    %20 = arith.subi %13, %c0_i32_15 : i32
    %21 = arith.addi %c0_i32_15, %20 : i32
    %c1_i32 = arith.constant 1 : i32
    %22:2 = scf.for %arg13 = %c0_i32_15 to %21 step %c1_i32 iter_args(%arg14 = %18, %arg15 = %19) -> (vector<1x128xf32>, vector<1x128xf32>)  : i32 {
      %c2_i32 = arith.constant 2 : i32
      %c0_i32_18 = arith.constant 0 : i32
      %26 = arith.cmpi eq, %c2_i32, %c0_i32_18 : i32
      %c1_i32_19 = arith.constant 1 : i32
      %27 = arith.select %26, %c1_i32_19, %c2_i32 : i32
      %28 = arith.remsi %arg13, %27 : i32
      %c0_i32_20 = arith.constant 0 : i32
      %29 = arith.cmpi ne, %28, %c0_i32_20 : i32
      %c0_i32_21 = arith.constant 0 : i32
      %30 = arith.cmpi slt, %28, %c0_i32_21 : i32
      %c0_i32_22 = arith.constant 0 : i32
      %31 = arith.cmpi slt, %27, %c0_i32_22 : i32
      %32 = arith.xori %30, %31 : i1
      %33 = arith.andi %32, %29 : i1
      %34 = arith.addi %28, %27 : i32
      %35 = arith.select %33, %34, %28 : i32
      %c8_i32_23 = arith.constant 8 : i32
      %36 = arith.muli %arg13, %c8_i32_23 : i32
      %37 = arith.addi %1, %36 : i32
      %c8_i32_24 = arith.constant 8 : i32
      %38 = arith.muli %35, %c8_i32_24 : i32
      %c0_i32_25 = arith.constant 0 : i32
      %39 = tpu.memref_slice %arg9[%37, %c0_i32_25] : memref<24x128xf32, #tpu.memory_space<any>> -> memref<8x128xf32, #tpu.memory_space<any>>
      %c0_i32_26 = arith.constant 0 : i32
      %40 = tpu.memref_slice %arg11[%38, %c0_i32_26] : memref<16x128xf32, #tpu.memory_space<vmem>> -> memref<8x128xf32, #tpu.memory_space<vmem>>
      %41 = tpu.memref_slice %arg12[%35] : memref<2x!tpu.dma_semaphore, #tpu.memory_space<semaphore_mem>> -> memref<1x!tpu.dma_semaphore, #tpu.memory_space<semaphore_mem>>
      %42 = tpu.memref_squeeze %41 : memref<1x!tpu.dma_semaphore, #tpu.memory_space<semaphore_mem>> -> memref<!tpu.dma_semaphore, #tpu.memory_space<semaphore_mem>>
      tpu.wait_dma2 semaphore(%42 : memref<!tpu.dma_semaphore, #tpu.memory_space<semaphore_mem>>) src(%39 : memref<8x128xf32, #tpu.memory_space<any>>) dst(%40 : memref<8x128xf32, #tpu.memory_space<vmem>>)
      %c1_i32_27 = arith.constant 1 : i32
      %43 = arith.addi %arg13, %c1_i32_27 : i32
      %44 = arith.cmpi slt, %43, %13 : i32
      %45 = arith.extui %44 : i1 to i32
      %c0_i32_28 = arith.constant 0 : i32
      %46 = arith.cmpi ne, %45, %c0_i32_28 : i32
      scf.if %46 {
        %c1_i32_121 = arith.constant 1 : i32
        %343 = arith.addi %arg13, %c1_i32_121 : i32
        %c1_i32_122 = arith.constant 1 : i32
        %344 = arith.subi %c1_i32_122, %35 : i32
        %c8_i32_123 = arith.constant 8 : i32
        %345 = arith.muli %343, %c8_i32_123 : i32
        %346 = arith.addi %1, %345 : i32
        %c8_i32_124 = arith.constant 8 : i32
        %347 = arith.muli %344, %c8_i32_124 : i32
        %c0_i32_125 = arith.constant 0 : i32
        %348 = tpu.memref_slice %arg9[%346, %c0_i32_125] : memref<24x128xf32, #tpu.memory_space<any>> -> memref<8x128xf32, #tpu.memory_space<any>>
        %c0_i32_126 = arith.constant 0 : i32
        %349 = tpu.memref_slice %arg11[%347, %c0_i32_126] : memref<16x128xf32, #tpu.memory_space<vmem>> -> memref<8x128xf32, #tpu.memory_space<vmem>>
        %350 = tpu.memref_slice %arg12[%344] : memref<2x!tpu.dma_semaphore, #tpu.memory_space<semaphore_mem>> -> memref<1x!tpu.dma_semaphore, #tpu.memory_space<semaphore_mem>>
        %351 = tpu.memref_squeeze %350 : memref<1x!tpu.dma_semaphore, #tpu.memory_space<semaphore_mem>> -> memref<!tpu.dma_semaphore, #tpu.memory_space<semaphore_mem>>
        tpu.enqueue_dma source(%348 : memref<8x128xf32, #tpu.memory_space<any>>) target(%349 : memref<8x128xf32, #tpu.memory_space<vmem>>) target_semaphore(%351 : memref<!tpu.dma_semaphore, #tpu.memory_space<semaphore_mem>>)
      } else {
      }
      %c8_i32_29 = arith.constant 8 : i32
      %47 = arith.muli %arg13, %c8_i32_29 : i32
      %c0_i32_30 = arith.constant 0 : i32
      %48 = arith.addi %47, %c0_i32_30 : i32
      %49 = arith.cmpi slt, %48, %3 : i32
      %50 = vector.broadcast %arg14 : vector<1x128xf32> to vector<32x128xf32>
      %51 = arith.mulf %5, %50 : vector<32x128xf32>
      %cst_31 = arith.constant dense<0.000000e+00> : vector<32xf32>
      %52 = vector.multi_reduction <add>, %51, %cst_31 [1] : vector<32x128xf32> to vector<32xf32>
      %53 = vector.shape_cast %52 : vector<32xf32> to vector<32x1xf32>
      %54 = arith.addf %53, %7 : vector<32x1xf32>
      %cst_32 = arith.constant 0.000000e+00 : f32
      %55 = vector.broadcast %cst_32 : f32 to vector<32x1xf32>
      %56 = arith.cmpf ogt, %54, %55 : vector<32x1xf32>
      %cst_33 = arith.constant 0.000000e+00 : f32
      %57 = vector.broadcast %cst_33 : f32 to vector<32x1xf32>
      %58 = arith.minimumf %54, %57 : vector<32x1xf32>
      %59 = math.exp %58 : vector<32x1xf32>
      %cst_34 = arith.constant 1.000000e+00 : f32
      %60 = vector.broadcast %cst_34 : f32 to vector<32x1xf32>
      %61 = arith.subf %59, %60 : vector<32x1xf32>
      %62 = arith.select %56, %54, %61 : vector<32x1xi1>, vector<32x1xf32>
      %63 = vector.broadcast %62 : vector<32x1xf32> to vector<32x128xf32>
      %64 = arith.mulf %63, %9 : vector<32x128xf32>
      %cst_35 = arith.constant dense<0.000000e+00> : vector<128xf32>
      %65 = vector.multi_reduction <add>, %64, %cst_35 [0] : vector<32x128xf32> to vector<128xf32>
      %66 = vector.shape_cast %65 : vector<128xf32> to vector<1x128xf32>
      %67 = arith.addf %66, %11 : vector<1x128xf32>
      %c8_i32_36 = arith.constant 8 : i32
      %68 = arith.muli %35, %c8_i32_36 : i32
      %c0_i32_37 = arith.constant 0 : i32
      %69 = arith.addi %68, %c0_i32_37 : i32
      %70 = arith.index_cast %69 : i32 to index
      %c0_38 = arith.constant 0 : index
      %71 = vector.load %arg11[%70, %c0_38] : memref<16x128xf32, #tpu.memory_space<vmem>>, vector<1x128xf32>
      %72 = arith.subf %67, %71 : vector<1x128xf32>
      %73 = arith.mulf %72, %72 : vector<1x128xf32>
      %cst_39 = arith.constant 0.000000e+00 : f32
      %74 = vector.broadcast %cst_39 : f32 to vector<1x128xf32>
      %75 = arith.select %49, %73, %74 : vector<1x128xf32>
      %76 = arith.addf %arg15, %75 : vector<1x128xf32>
      %77 = arith.addi %1, %48 : i32
      %78 = arith.index_cast %77 : i32 to index
      %79 = memref.load %arg3[%78] : memref<24xf32, #tpu.memory_space<smem>>
      %cst_40 = arith.constant 0.000000e+00 : f32
      %80 = arith.select %49, %79, %cst_40 : f32
      %81 = vector.broadcast %80 : f32 to vector<1x128xf32>
      %82 = arith.mulf %81, %67 : vector<1x128xf32>
      %83 = arith.addf %arg14, %82 : vector<1x128xf32>
      %c8_i32_41 = arith.constant 8 : i32
      %84 = arith.muli %arg13, %c8_i32_41 : i32
      %c1_i32_42 = arith.constant 1 : i32
      %85 = arith.addi %84, %c1_i32_42 : i32
      %86 = arith.cmpi slt, %85, %3 : i32
      %87 = vector.broadcast %83 : vector<1x128xf32> to vector<32x128xf32>
      %88 = arith.mulf %5, %87 : vector<32x128xf32>
      %cst_43 = arith.constant dense<0.000000e+00> : vector<32xf32>
      %89 = vector.multi_reduction <add>, %88, %cst_43 [1] : vector<32x128xf32> to vector<32xf32>
      %90 = vector.shape_cast %89 : vector<32xf32> to vector<32x1xf32>
      %91 = arith.addf %90, %7 : vector<32x1xf32>
      %cst_44 = arith.constant 0.000000e+00 : f32
      %92 = vector.broadcast %cst_44 : f32 to vector<32x1xf32>
      %93 = arith.cmpf ogt, %91, %92 : vector<32x1xf32>
      %cst_45 = arith.constant 0.000000e+00 : f32
      %94 = vector.broadcast %cst_45 : f32 to vector<32x1xf32>
      %95 = arith.minimumf %91, %94 : vector<32x1xf32>
      %96 = math.exp %95 : vector<32x1xf32>
      %cst_46 = arith.constant 1.000000e+00 : f32
      %97 = vector.broadcast %cst_46 : f32 to vector<32x1xf32>
      %98 = arith.subf %96, %97 : vector<32x1xf32>
      %99 = arith.select %93, %91, %98 : vector<32x1xi1>, vector<32x1xf32>
      %100 = vector.broadcast %99 : vector<32x1xf32> to vector<32x128xf32>
      %101 = arith.mulf %100, %9 : vector<32x128xf32>
      %cst_47 = arith.constant dense<0.000000e+00> : vector<128xf32>
      %102 = vector.multi_reduction <add>, %101, %cst_47 [0] : vector<32x128xf32> to vector<128xf32>
      %103 = vector.shape_cast %102 : vector<128xf32> to vector<1x128xf32>
      %104 = arith.addf %103, %11 : vector<1x128xf32>
      %c8_i32_48 = arith.constant 8 : i32
      %105 = arith.muli %35, %c8_i32_48 : i32
      %c1_i32_49 = arith.constant 1 : i32
      %106 = arith.addi %105, %c1_i32_49 : i32
      %107 = arith.index_cast %106 : i32 to index
      %c0_50 = arith.constant 0 : index
      %108 = vector.load %arg11[%107, %c0_50] : memref<16x128xf32, #tpu.memory_space<vmem>>, vector<1x128xf32>
      %109 = arith.subf %104, %108 : vector<1x128xf32>
      %110 = arith.mulf %109, %109 : vector<1x128xf32>
      %cst_51 = arith.constant 0.000000e+00 : f32
      %111 = vector.broadcast %cst_51 : f32 to vector<1x128xf32>
      %112 = arith.select %86, %110, %111 : vector<1x128xf32>
      %113 = arith.addf %76, %112 : vector<1x128xf32>
      %114 = arith.addi %1, %85 : i32
      %115 = arith.index_cast %114 : i32 to index
      %116 = memref.load %arg3[%115] : memref<24xf32, #tpu.memory_space<smem>>
      %cst_52 = arith.constant 0.000000e+00 : f32
      %117 = arith.select %86, %116, %cst_52 : f32
      %118 = vector.broadcast %117 : f32 to vector<1x128xf32>
      %119 = arith.mulf %118, %104 : vector<1x128xf32>
      %120 = arith.addf %83, %119 : vector<1x128xf32>
      %c8_i32_53 = arith.constant 8 : i32
      %121 = arith.muli %arg13, %c8_i32_53 : i32
      %c2_i32_54 = arith.constant 2 : i32
      %122 = arith.addi %121, %c2_i32_54 : i32
      %123 = arith.cmpi slt, %122, %3 : i32
      %124 = vector.broadcast %120 : vector<1x128xf32> to vector<32x128xf32>
      %125 = arith.mulf %5, %124 : vector<32x128xf32>
      %cst_55 = arith.constant dense<0.000000e+00> : vector<32xf32>
      %126 = vector.multi_reduction <add>, %125, %cst_55 [1] : vector<32x128xf32> to vector<32xf32>
      %127 = vector.shape_cast %126 : vector<32xf32> to vector<32x1xf32>
      %128 = arith.addf %127, %7 : vector<32x1xf32>
      %cst_56 = arith.constant 0.000000e+00 : f32
      %129 = vector.broadcast %cst_56 : f32 to vector<32x1xf32>
      %130 = arith.cmpf ogt, %128, %129 : vector<32x1xf32>
      %cst_57 = arith.constant 0.000000e+00 : f32
      %131 = vector.broadcast %cst_57 : f32 to vector<32x1xf32>
      %132 = arith.minimumf %128, %131 : vector<32x1xf32>
      %133 = math.exp %132 : vector<32x1xf32>
      %cst_58 = arith.constant 1.000000e+00 : f32
      %134 = vector.broadcast %cst_58 : f32 to vector<32x1xf32>
      %135 = arith.subf %133, %134 : vector<32x1xf32>
      %136 = arith.select %130, %128, %135 : vector<32x1xi1>, vector<32x1xf32>
      %137 = vector.broadcast %136 : vector<32x1xf32> to vector<32x128xf32>
      %138 = arith.mulf %137, %9 : vector<32x128xf32>
      %cst_59 = arith.constant dense<0.000000e+00> : vector<128xf32>
      %139 = vector.multi_reduction <add>, %138, %cst_59 [0] : vector<32x128xf32> to vector<128xf32>
      %140 = vector.shape_cast %139 : vector<128xf32> to vector<1x128xf32>
      %141 = arith.addf %140, %11 : vector<1x128xf32>
      %c8_i32_60 = arith.constant 8 : i32
      %142 = arith.muli %35, %c8_i32_60 : i32
      %c2_i32_61 = arith.constant 2 : i32
      %143 = arith.addi %142, %c2_i32_61 : i32
      %144 = arith.index_cast %143 : i32 to index
      %c0_62 = arith.constant 0 : index
      %145 = vector.load %arg11[%144, %c0_62] : memref<16x128xf32, #tpu.memory_space<vmem>>, vector<1x128xf32>
      %146 = arith.subf %141, %145 : vector<1x128xf32>
      %147 = arith.mulf %146, %146 : vector<1x128xf32>
      %cst_63 = arith.constant 0.000000e+00 : f32
      %148 = vector.broadcast %cst_63 : f32 to vector<1x128xf32>
      %149 = arith.select %123, %147, %148 : vector<1x128xf32>
      %150 = arith.addf %113, %149 : vector<1x128xf32>
      %151 = arith.addi %1, %122 : i32
      %152 = arith.index_cast %151 : i32 to index
      %153 = memref.load %arg3[%152] : memref<24xf32, #tpu.memory_space<smem>>
      %cst_64 = arith.constant 0.000000e+00 : f32
      %154 = arith.select %123, %153, %cst_64 : f32
      %155 = vector.broadcast %154 : f32 to vector<1x128xf32>
      %156 = arith.mulf %155, %141 : vector<1x128xf32>
      %157 = arith.addf %120, %156 : vector<1x128xf32>
      %c8_i32_65 = arith.constant 8 : i32
      %158 = arith.muli %arg13, %c8_i32_65 : i32
      %c3_i32 = arith.constant 3 : i32
      %159 = arith.addi %158, %c3_i32 : i32
      %160 = arith.cmpi slt, %159, %3 : i32
      %161 = vector.broadcast %157 : vector<1x128xf32> to vector<32x128xf32>
      %162 = arith.mulf %5, %161 : vector<32x128xf32>
      %cst_66 = arith.constant dense<0.000000e+00> : vector<32xf32>
      %163 = vector.multi_reduction <add>, %162, %cst_66 [1] : vector<32x128xf32> to vector<32xf32>
      %164 = vector.shape_cast %163 : vector<32xf32> to vector<32x1xf32>
      %165 = arith.addf %164, %7 : vector<32x1xf32>
      %cst_67 = arith.constant 0.000000e+00 : f32
      %166 = vector.broadcast %cst_67 : f32 to vector<32x1xf32>
      %167 = arith.cmpf ogt, %165, %166 : vector<32x1xf32>
      %cst_68 = arith.constant 0.000000e+00 : f32
      %168 = vector.broadcast %cst_68 : f32 to vector<32x1xf32>
      %169 = arith.minimumf %165, %168 : vector<32x1xf32>
      %170 = math.exp %169 : vector<32x1xf32>
      %cst_69 = arith.constant 1.000000e+00 : f32
      %171 = vector.broadcast %cst_69 : f32 to vector<32x1xf32>
      %172 = arith.subf %170, %171 : vector<32x1xf32>
      %173 = arith.select %167, %165, %172 : vector<32x1xi1>, vector<32x1xf32>
      %174 = vector.broadcast %173 : vector<32x1xf32> to vector<32x128xf32>
      %175 = arith.mulf %174, %9 : vector<32x128xf32>
      %cst_70 = arith.constant dense<0.000000e+00> : vector<128xf32>
      %176 = vector.multi_reduction <add>, %175, %cst_70 [0] : vector<32x128xf32> to vector<128xf32>
      %177 = vector.shape_cast %176 : vector<128xf32> to vector<1x128xf32>
      %178 = arith.addf %177, %11 : vector<1x128xf32>
      %c8_i32_71 = arith.constant 8 : i32
      %179 = arith.muli %35, %c8_i32_71 : i32
      %c3_i32_72 = arith.constant 3 : i32
      %180 = arith.addi %179, %c3_i32_72 : i32
      %181 = arith.index_cast %180 : i32 to index
      %c0_73 = arith.constant 0 : index
      %182 = vector.load %arg11[%181, %c0_73] : memref<16x128xf32, #tpu.memory_space<vmem>>, vector<1x128xf32>
      %183 = arith.subf %178, %182 : vector<1x128xf32>
      %184 = arith.mulf %183, %183 : vector<1x128xf32>
      %cst_74 = arith.constant 0.000000e+00 : f32
      %185 = vector.broadcast %cst_74 : f32 to vector<1x128xf32>
      %186 = arith.select %160, %184, %185 : vector<1x128xf32>
      %187 = arith.addf %150, %186 : vector<1x128xf32>
      %188 = arith.addi %1, %159 : i32
      %189 = arith.index_cast %188 : i32 to index
      %190 = memref.load %arg3[%189] : memref<24xf32, #tpu.memory_space<smem>>
      %cst_75 = arith.constant 0.000000e+00 : f32
      %191 = arith.select %160, %190, %cst_75 : f32
      %192 = vector.broadcast %191 : f32 to vector<1x128xf32>
      %193 = arith.mulf %192, %178 : vector<1x128xf32>
      %194 = arith.addf %157, %193 : vector<1x128xf32>
      %c8_i32_76 = arith.constant 8 : i32
      %195 = arith.muli %arg13, %c8_i32_76 : i32
      %c4_i32 = arith.constant 4 : i32
      %196 = arith.addi %195, %c4_i32 : i32
      %197 = arith.cmpi slt, %196, %3 : i32
      %198 = vector.broadcast %194 : vector<1x128xf32> to vector<32x128xf32>
      %199 = arith.mulf %5, %198 : vector<32x128xf32>
      %cst_77 = arith.constant dense<0.000000e+00> : vector<32xf32>
      %200 = vector.multi_reduction <add>, %199, %cst_77 [1] : vector<32x128xf32> to vector<32xf32>
      %201 = vector.shape_cast %200 : vector<32xf32> to vector<32x1xf32>
      %202 = arith.addf %201, %7 : vector<32x1xf32>
      %cst_78 = arith.constant 0.000000e+00 : f32
      %203 = vector.broadcast %cst_78 : f32 to vector<32x1xf32>
      %204 = arith.cmpf ogt, %202, %203 : vector<32x1xf32>
      %cst_79 = arith.constant 0.000000e+00 : f32
      %205 = vector.broadcast %cst_79 : f32 to vector<32x1xf32>
      %206 = arith.minimumf %202, %205 : vector<32x1xf32>
      %207 = math.exp %206 : vector<32x1xf32>
      %cst_80 = arith.constant 1.000000e+00 : f32
      %208 = vector.broadcast %cst_80 : f32 to vector<32x1xf32>
      %209 = arith.subf %207, %208 : vector<32x1xf32>
      %210 = arith.select %204, %202, %209 : vector<32x1xi1>, vector<32x1xf32>
      %211 = vector.broadcast %210 : vector<32x1xf32> to vector<32x128xf32>
      %212 = arith.mulf %211, %9 : vector<32x128xf32>
      %cst_81 = arith.constant dense<0.000000e+00> : vector<128xf32>
      %213 = vector.multi_reduction <add>, %212, %cst_81 [0] : vector<32x128xf32> to vector<128xf32>
      %214 = vector.shape_cast %213 : vector<128xf32> to vector<1x128xf32>
      %215 = arith.addf %214, %11 : vector<1x128xf32>
      %c8_i32_82 = arith.constant 8 : i32
      %216 = arith.muli %35, %c8_i32_82 : i32
      %c4_i32_83 = arith.constant 4 : i32
      %217 = arith.addi %216, %c4_i32_83 : i32
      %218 = arith.index_cast %217 : i32 to index
      %c0_84 = arith.constant 0 : index
      %219 = vector.load %arg11[%218, %c0_84] : memref<16x128xf32, #tpu.memory_space<vmem>>, vector<1x128xf32>
      %220 = arith.subf %215, %219 : vector<1x128xf32>
      %221 = arith.mulf %220, %220 : vector<1x128xf32>
      %cst_85 = arith.constant 0.000000e+00 : f32
      %222 = vector.broadcast %cst_85 : f32 to vector<1x128xf32>
      %223 = arith.select %197, %221, %222 : vector<1x128xf32>
      %224 = arith.addf %187, %223 : vector<1x128xf32>
      %225 = arith.addi %1, %196 : i32
      %226 = arith.index_cast %225 : i32 to index
      %227 = memref.load %arg3[%226] : memref<24xf32, #tpu.memory_space<smem>>
      %cst_86 = arith.constant 0.000000e+00 : f32
      %228 = arith.select %197, %227, %cst_86 : f32
      %229 = vector.broadcast %228 : f32 to vector<1x128xf32>
      %230 = arith.mulf %229, %215 : vector<1x128xf32>
      %231 = arith.addf %194, %230 : vector<1x128xf32>
      %c8_i32_87 = arith.constant 8 : i32
      %232 = arith.muli %arg13, %c8_i32_87 : i32
      %c5_i32 = arith.constant 5 : i32
      %233 = arith.addi %232, %c5_i32 : i32
      %234 = arith.cmpi slt, %233, %3 : i32
      %235 = vector.broadcast %231 : vector<1x128xf32> to vector<32x128xf32>
      %236 = arith.mulf %5, %235 : vector<32x128xf32>
      %cst_88 = arith.constant dense<0.000000e+00> : vector<32xf32>
      %237 = vector.multi_reduction <add>, %236, %cst_88 [1] : vector<32x128xf32> to vector<32xf32>
      %238 = vector.shape_cast %237 : vector<32xf32> to vector<32x1xf32>
      %239 = arith.addf %238, %7 : vector<32x1xf32>
      %cst_89 = arith.constant 0.000000e+00 : f32
      %240 = vector.broadcast %cst_89 : f32 to vector<32x1xf32>
      %241 = arith.cmpf ogt, %239, %240 : vector<32x1xf32>
      %cst_90 = arith.constant 0.000000e+00 : f32
      %242 = vector.broadcast %cst_90 : f32 to vector<32x1xf32>
      %243 = arith.minimumf %239, %242 : vector<32x1xf32>
      %244 = math.exp %243 : vector<32x1xf32>
      %cst_91 = arith.constant 1.000000e+00 : f32
      %245 = vector.broadcast %cst_91 : f32 to vector<32x1xf32>
      %246 = arith.subf %244, %245 : vector<32x1xf32>
      %247 = arith.select %241, %239, %246 : vector<32x1xi1>, vector<32x1xf32>
      %248 = vector.broadcast %247 : vector<32x1xf32> to vector<32x128xf32>
      %249 = arith.mulf %248, %9 : vector<32x128xf32>
      %cst_92 = arith.constant dense<0.000000e+00> : vector<128xf32>
      %250 = vector.multi_reduction <add>, %249, %cst_92 [0] : vector<32x128xf32> to vector<128xf32>
      %251 = vector.shape_cast %250 : vector<128xf32> to vector<1x128xf32>
      %252 = arith.addf %251, %11 : vector<1x128xf32>
      %c8_i32_93 = arith.constant 8 : i32
      %253 = arith.muli %35, %c8_i32_93 : i32
      %c5_i32_94 = arith.constant 5 : i32
      %254 = arith.addi %253, %c5_i32_94 : i32
      %255 = arith.index_cast %254 : i32 to index
      %c0_95 = arith.constant 0 : index
      %256 = vector.load %arg11[%255, %c0_95] : memref<16x128xf32, #tpu.memory_space<vmem>>, vector<1x128xf32>
      %257 = arith.subf %252, %256 : vector<1x128xf32>
      %258 = arith.mulf %257, %257 : vector<1x128xf32>
      %cst_96 = arith.constant 0.000000e+00 : f32
      %259 = vector.broadcast %cst_96 : f32 to vector<1x128xf32>
      %260 = arith.select %234, %258, %259 : vector<1x128xf32>
      %261 = arith.addf %224, %260 : vector<1x128xf32>
      %262 = arith.addi %1, %233 : i32
      %263 = arith.index_cast %262 : i32 to index
      %264 = memref.load %arg3[%263] : memref<24xf32, #tpu.memory_space<smem>>
      %cst_97 = arith.constant 0.000000e+00 : f32
      %265 = arith.select %234, %264, %cst_97 : f32
      %266 = vector.broadcast %265 : f32 to vector<1x128xf32>
      %267 = arith.mulf %266, %252 : vector<1x128xf32>
      %268 = arith.addf %231, %267 : vector<1x128xf32>
      %c8_i32_98 = arith.constant 8 : i32
      %269 = arith.muli %arg13, %c8_i32_98 : i32
      %c6_i32 = arith.constant 6 : i32
      %270 = arith.addi %269, %c6_i32 : i32
      %271 = arith.cmpi slt, %270, %3 : i32
      %272 = vector.broadcast %268 : vector<1x128xf32> to vector<32x128xf32>
      %273 = arith.mulf %5, %272 : vector<32x128xf32>
      %cst_99 = arith.constant dense<0.000000e+00> : vector<32xf32>
      %274 = vector.multi_reduction <add>, %273, %cst_99 [1] : vector<32x128xf32> to vector<32xf32>
      %275 = vector.shape_cast %274 : vector<32xf32> to vector<32x1xf32>
      %276 = arith.addf %275, %7 : vector<32x1xf32>
      %cst_100 = arith.constant 0.000000e+00 : f32
      %277 = vector.broadcast %cst_100 : f32 to vector<32x1xf32>
      %278 = arith.cmpf ogt, %276, %277 : vector<32x1xf32>
      %cst_101 = arith.constant 0.000000e+00 : f32
      %279 = vector.broadcast %cst_101 : f32 to vector<32x1xf32>
      %280 = arith.minimumf %276, %279 : vector<32x1xf32>
      %281 = math.exp %280 : vector<32x1xf32>
      %cst_102 = arith.constant 1.000000e+00 : f32
      %282 = vector.broadcast %cst_102 : f32 to vector<32x1xf32>
      %283 = arith.subf %281, %282 : vector<32x1xf32>
      %284 = arith.select %278, %276, %283 : vector<32x1xi1>, vector<32x1xf32>
      %285 = vector.broadcast %284 : vector<32x1xf32> to vector<32x128xf32>
      %286 = arith.mulf %285, %9 : vector<32x128xf32>
      %cst_103 = arith.constant dense<0.000000e+00> : vector<128xf32>
      %287 = vector.multi_reduction <add>, %286, %cst_103 [0] : vector<32x128xf32> to vector<128xf32>
      %288 = vector.shape_cast %287 : vector<128xf32> to vector<1x128xf32>
      %289 = arith.addf %288, %11 : vector<1x128xf32>
      %c8_i32_104 = arith.constant 8 : i32
      %290 = arith.muli %35, %c8_i32_104 : i32
      %c6_i32_105 = arith.constant 6 : i32
      %291 = arith.addi %290, %c6_i32_105 : i32
      %292 = arith.index_cast %291 : i32 to index
      %c0_106 = arith.constant 0 : index
      %293 = vector.load %arg11[%292, %c0_106] : memref<16x128xf32, #tpu.memory_space<vmem>>, vector<1x128xf32>
      %294 = arith.subf %289, %293 : vector<1x128xf32>
      %295 = arith.mulf %294, %294 : vector<1x128xf32>
      %cst_107 = arith.constant 0.000000e+00 : f32
      %296 = vector.broadcast %cst_107 : f32 to vector<1x128xf32>
      %297 = arith.select %271, %295, %296 : vector<1x128xf32>
      %298 = arith.addf %261, %297 : vector<1x128xf32>
      %299 = arith.addi %1, %270 : i32
      %300 = arith.index_cast %299 : i32 to index
      %301 = memref.load %arg3[%300] : memref<24xf32, #tpu.memory_space<smem>>
      %cst_108 = arith.constant 0.000000e+00 : f32
      %302 = arith.select %271, %301, %cst_108 : f32
      %303 = vector.broadcast %302 : f32 to vector<1x128xf32>
      %304 = arith.mulf %303, %289 : vector<1x128xf32>
      %305 = arith.addf %268, %304 : vector<1x128xf32>
      %c8_i32_109 = arith.constant 8 : i32
      %306 = arith.muli %arg13, %c8_i32_109 : i32
      %c7_i32_110 = arith.constant 7 : i32
      %307 = arith.addi %306, %c7_i32_110 : i32
      %308 = arith.cmpi slt, %307, %3 : i32
      %309 = vector.broadcast %305 : vector<1x128xf32> to vector<32x128xf32>
      %310 = arith.mulf %5, %309 : vector<32x128xf32>
      %cst_111 = arith.constant dense<0.000000e+00> : vector<32xf32>
      %311 = vector.multi_reduction <add>, %310, %cst_111 [1] : vector<32x128xf32> to vector<32xf32>
      %312 = vector.shape_cast %311 : vector<32xf32> to vector<32x1xf32>
      %313 = arith.addf %312, %7 : vector<32x1xf32>
      %cst_112 = arith.constant 0.000000e+00 : f32
      %314 = vector.broadcast %cst_112 : f32 to vector<32x1xf32>
      %315 = arith.cmpf ogt, %313, %314 : vector<32x1xf32>
      %cst_113 = arith.constant 0.000000e+00 : f32
      %316 = vector.broadcast %cst_113 : f32 to vector<32x1xf32>
      %317 = arith.minimumf %313, %316 : vector<32x1xf32>
      %318 = math.exp %317 : vector<32x1xf32>
      %cst_114 = arith.constant 1.000000e+00 : f32
      %319 = vector.broadcast %cst_114 : f32 to vector<32x1xf32>
      %320 = arith.subf %318, %319 : vector<32x1xf32>
      %321 = arith.select %315, %313, %320 : vector<32x1xi1>, vector<32x1xf32>
      %322 = vector.broadcast %321 : vector<32x1xf32> to vector<32x128xf32>
      %323 = arith.mulf %322, %9 : vector<32x128xf32>
      %cst_115 = arith.constant dense<0.000000e+00> : vector<128xf32>
      %324 = vector.multi_reduction <add>, %323, %cst_115 [0] : vector<32x128xf32> to vector<128xf32>
      %325 = vector.shape_cast %324 : vector<128xf32> to vector<1x128xf32>
      %326 = arith.addf %325, %11 : vector<1x128xf32>
      %c8_i32_116 = arith.constant 8 : i32
      %327 = arith.muli %35, %c8_i32_116 : i32
      %c7_i32_117 = arith.constant 7 : i32
      %328 = arith.addi %327, %c7_i32_117 : i32
      %329 = arith.index_cast %328 : i32 to index
      %c0_118 = arith.constant 0 : index
      %330 = vector.load %arg11[%329, %c0_118] : memref<16x128xf32, #tpu.memory_space<vmem>>, vector<1x128xf32>
      %331 = arith.subf %326, %330 : vector<1x128xf32>
      %332 = arith.mulf %331, %331 : vector<1x128xf32>
      %cst_119 = arith.constant 0.000000e+00 : f32
      %333 = vector.broadcast %cst_119 : f32 to vector<1x128xf32>
      %334 = arith.select %308, %332, %333 : vector<1x128xf32>
      %335 = arith.addf %298, %334 : vector<1x128xf32>
      %336 = arith.addi %1, %307 : i32
      %337 = arith.index_cast %336 : i32 to index
      %338 = memref.load %arg3[%337] : memref<24xf32, #tpu.memory_space<smem>>
      %cst_120 = arith.constant 0.000000e+00 : f32
      %339 = arith.select %308, %338, %cst_120 : f32
      %340 = vector.broadcast %339 : f32 to vector<1x128xf32>
      %341 = arith.mulf %340, %326 : vector<1x128xf32>
      %342 = arith.addf %305, %341 : vector<1x128xf32>
      scf.yield %342, %335 : vector<1x128xf32>, vector<1x128xf32>
    }
    %23 = vector.shape_cast %22#1 : vector<1x128xf32> to vector<1x128xf32>
    %24 = vector.broadcast %23 : vector<1x128xf32> to vector<8x128xf32>
    %c0_16 = arith.constant 0 : index
    %c0_17 = arith.constant 0 : index
    %25 = vector.load %arg10[%c0_16, %c0_17] : memref<8x128xf32, #tpu.memory_space<vmem>>, vector<8x128xf32>
    tpu.vector_store %arg10[%c0_16, %c0_17], %24 {strides = array<i32>} : memref<8x128xf32, #tpu.memory_space<vmem>>, vector<8x128xf32>,
    return
  }
  func.func @transform_0(%arg0: i32, %arg1: memref<2xi32, #tpu.memory_space<smem>>, %arg2: memref<2xi32, #tpu.memory_space<smem>>, %arg3: memref<24xf32, #tpu.memory_space<smem>>) -> (i32, i32, i32) {
    %c0_i32 = arith.constant 0 : i32
    %c0_i32_0 = arith.constant 0 : i32
    %c0_i32_1 = arith.constant 0 : i32
    return %arg0, %c0_i32, %c0_i32_0 : i32, i32, i32
  }
  func.func @transform_1(%arg0: i32, %arg1: memref<2xi32, #tpu.memory_space<smem>>, %arg2: memref<2xi32, #tpu.memory_space<smem>>, %arg3: memref<24xf32, #tpu.memory_space<smem>>) -> (i32, i32, i32) {
    %c0_i32 = arith.constant 0 : i32
    %c0_i32_0 = arith.constant 0 : i32
    %c0_i32_1 = arith.constant 0 : i32
    return %arg0, %c0_i32, %c0_i32_0 : i32, i32, i32
  }
  func.func @transform_2(%arg0: i32, %arg1: memref<2xi32, #tpu.memory_space<smem>>, %arg2: memref<2xi32, #tpu.memory_space<smem>>, %arg3: memref<24xf32, #tpu.memory_space<smem>>) -> (i32, i32, i32) {
    %c0_i32 = arith.constant 0 : i32
    %c0_i32_0 = arith.constant 0 : i32
    %c0_i32_1 = arith.constant 0 : i32
    return %arg0, %c0_i32, %c0_i32_0 : i32, i32, i32
  }
  func.func @transform_3(%arg0: i32, %arg1: memref<2xi32, #tpu.memory_space<smem>>, %arg2: memref<2xi32, #tpu.memory_space<smem>>, %arg3: memref<24xf32, #tpu.memory_space<smem>>) -> (i32, i32, i32) {
    %c0_i32 = arith.constant 0 : i32
    %c0_i32_0 = arith.constant 0 : i32
    %c0_i32_1 = arith.constant 0 : i32
    return %arg0, %c0_i32, %c0_i32_0 : i32, i32, i32
  }
  func.func @transform_4(%arg0: i32, %arg1: memref<2xi32, #tpu.memory_space<smem>>, %arg2: memref<2xi32, #tpu.memory_space<smem>>, %arg3: memref<24xf32, #tpu.memory_space<smem>>) -> (i32, i32, i32) {
    %c0_i32 = arith.constant 0 : i32
    %c0_i32_0 = arith.constant 0 : i32
    %c0_i32_1 = arith.constant 0 : i32
    return %arg0, %c0_i32, %c0_i32_0 : i32, i32, i32
  }
  func.func @transform_6(%arg0: i32, %arg1: memref<2xi32, #tpu.memory_space<smem>>, %arg2: memref<2xi32, #tpu.memory_space<smem>>, %arg3: memref<24xf32, #tpu.memory_space<smem>>) -> (i32, i32) {
    %c0_i32 = arith.constant 0 : i32
    %c0_i32_0 = arith.constant 0 : i32
    return %arg0, %c0_i32 : i32, i32
  }
}

</mosaic_0001>

<bundles_post_ra>
// kernel: _tnode_forward.2
= control target key start
LH: loop header
LB: loop body
LE: loop exit
PB: predicated region body
PF: predicated region fallthrough
CT: control target
= control target key end

     0   :  { %v1159_v0 = vmov 0.0   ;;  %vm1160_vm0 = vmmov 0   ;;  %v317_v46 = vlaneseq  ;;  %s1645_s2 = inlined_call_operand.vmem [shape: bf16[128,128], index: 2, kind: input, shape index: {}]   ;;  %s1646_s4 = inlined_call_operand.vmem [shape: bf16[128,128], index: 4, kind: input, shape index: {}]   ;;  %s1647_s0 = inlined_call_operand.vmem [shape: bf16[16,128], index: 0, kind: input, shape index: {}]   ;;  %s1648_s6 = inlined_call_operand.vmem [shape: bf16[128,128], index: 6, kind: input, shape index: {}]   ;;  %s1649_s3 = inlined_call_operand.vmem [shape: f32[1,128], index: 3, kind: input, shape index: {}]   ;;  %s1650_s8 = inlined_call_operand.vmem [shape: bf16[128,128], index: 8, kind: input, shape index: {}]   ;;  %s1651_s5 = inlined_call_operand.vmem [shape: f32[1,128], index: 5, kind: input, shape index: {}]   ;;  %s1652_s1 = inlined_call_operand.vmem [shape: bf16[16,128], index: 1, kind: input, shape index: {}]   ;;  %s1653_s7 = inlined_call_operand.vmem [shape: f32[1,128], index: 7, kind: input, shape index: {}]   ;;  %s1654_s9 = inlined_call_operand.vmem [shape: f32[1,128], index: 9, kind: input, shape index: {}]   ;;  %s1655_s10 = inlined_call_operand.vmem [shape: f32[16,128], index: 10, kind: output, shape index: {0}]   ;;  %s1656_s11 = inlined_call_operand.vmem [shape: f32[16,128], index: 11, kind: output, shape index: {1}]  }
   0x1   :  { %929 = vmatprep.subr.bf16.mxu0 %v1159_v0  ;;  %v1225_v1 = vld [vmem:[%s1645_s2] sm:$0xff]   ;;  %945 = vmatprep.mubr.msk.bf16.mxu0 %vm1160_vm0, %v1159_v0  ;;  %v1236_v2 = vld [vmem:[%s1645_s2 + $0x8] sm:$0xff]   ;;  %v1243_v3 = vld [vmem:[%s1645_s2 + $0x10] sm:$0xff]  }
   0x2   :  { %949 = vmatprep.subr.bf16.mxu1 %v1159_v0  ;;  %965 = vmatprep.mubr.msk.bf16.mxu1 %vm1160_vm0, %v1159_v0  ;;  %v1249_v4 = vld [vmem:[%s1646_s4] sm:$0xff]   ;;  %v1255_v5 = vld [vmem:[%s1645_s2 + $0x18] sm:$0xff]   ;;  %v1260_v6 = vld [vmem:[%s1646_s4 + $0x8] sm:$0xff]   ;;  %v1423_v47 = vand.u32 127, %v317_v46 }
   0x3   :  { %930 = vmatpush3.bf16.msra.mxu0 %v1225_v1  ;;  %950 = vmatpush3.bf16.msra.mxu1 %v1249_v4  ;;  %v1269_v7 = vld [vmem:[%s1645_s2 + $0x20] sm:$0xff]   ;;  %v1278_v8 = vld [vmem:[%s1645_s2 + $0x28] sm:$0xff]   ;;  %v1285_v9 = vld [vmem:[%s1645_s2 + $0x30] sm:$0xff]  }
   0x4   :  { %931 = vmatprep.subr.bf16.mxu0 %v1159_v0  ;;  %951 = vmatprep.subr.bf16.mxu1 %v1159_v0  ;;  %v1292_v10 = vld [vmem:[%s1645_s2 + $0x38] sm:$0xff]   ;;  %v1297_v11 = vld [vmem:[%s1647_s0] sm:$0xff]   ;;  %v1308_v12 = vld [vmem:[%s1646_s4 + $0x10] sm:$0xff]   ;;  %vm319_vm3 = vcmp.lt.s32.totalorder %v1423_v47, 8  ;;  %vm536_vm9 = vcmp.eq.s32.totalorder %v1423_v47, 8  ;;  %vm551_vm10 = vcmp.eq.s32.totalorder %v1423_v47, 9 }
   0x5   :  { %v1315_v13 = vld [vmem:[%s1646_s4 + $0x18] sm:$0xff]   ;;  %v1322_v14 = vld [vmem:[%s1646_s4 + $0x20] sm:$0xff]   ;;  %v1329_v15 = vld [vmem:[%s1646_s4 + $0x28] sm:$0xff]  }
   0x6   :  { %v1336_v16 = vld [vmem:[%s1646_s4 + $0x30] sm:$0xff]   ;;  %v1343_v17 = vld [vmem:[%s1646_s4 + $0x38] sm:$0xff]   ;;  %v1350_v18 = vld [vmem:[%s1648_s6] sm:$0xff]  }
   0x7   :  { %932 = vmatpush3.bf16.msra.mxu0 %v1236_v2  ;;  %952 = vmatpush3.bf16.msra.mxu1 %v1260_v6  ;;  %v1356_v19 = vld [vmem:[%s1648_s6 + $0x8] sm:$0xff]   ;;  %v1363_v20 = vld [vmem:[%s1648_s6 + $0x10] sm:$0xff]   ;;  %v1370_v21 = vld [vmem:[%s1648_s6 + $0x18] sm:$0xff]  }
   0x8   :  { %933 = vmatprep.subr.bf16.mxu0 %v1159_v0  ;;  %953 = vmatprep.subr.bf16.mxu1 %v1159_v0  ;;  %v1377_v22 = vld [vmem:[%s1648_s6 + $0x20] sm:$0xff]   ;;  %v1384_v23 = vld [vmem:[%s1648_s6 + $0x28] sm:$0xff]   ;;  %v1391_v24 = vld [vmem:[%s1648_s6 + $0x30] sm:$0xff]  }
   0x9   :  { %v1399_v25 = vld [vmem:[%s1649_s3] ss:$0 sm:$0xff]  ;;  %v1115_v43 = vld [vmem:[%s1648_s6 + $0x38] sm:$0xff]   ;;  %v1418_v45 = vld [vmem:[%s1650_s8 + $0x8] sm:$0xff]  }
   0xa   :  { %v1412_v44 = vld [vmem:[%s1650_s8] sm:$0xff]   ;;  %vm1440_vm4 = vmpackc.low %vm319_vm3, %vm319_vm3  ;;  %v1491_v58 = vld [vmem:[%s1650_s8 + $0x10] sm:$0xff]  }
   0xb   :  { %934 = vmatpush3.bf16.msra.mxu0 %v1243_v3  ;;  %954 = vmatpush3.bf16.msra.mxu1 %v1308_v12  ;;  %v1428_v48 = vld [vmem:[%s1651_s5] ss:$0 sm:$0xff]  ;;  %v1498_v59 = vld [vmem:[%s1650_s8 + $0x18] sm:$0xff]   ;;  %v1512_v61 = vld [vmem:[%s1650_s8 + $0x28] sm:$0xff]  }
   0xc   :  { %935 = vmatprep.subr.bf16.mxu0 %v1159_v0  ;;  %955 = vmatprep.subr.bf16.mxu1 %v1159_v0  ;;  %v1466_v57 = vld [vmem:[%s1652_s1] sm:$0xff]   ;;  %v1519_v62 = vld [vmem:[%s1650_s8 + $0x30] sm:$0xff]   ;;  %v1526_v63 = vld [vmem:[%s1650_s8 + $0x38] sm:$0xff]  }
   0xd   :  { %v1505_v60 = vld [vmem:[%s1650_s8 + $0x20] sm:$0xff]  }
   0xf   :  { %936 = vmatpush3.bf16.msra.mxu0 %v1255_v5  ;;  %956 = vmatpush3.bf16.msra.mxu1 %v1315_v13 }
  0x10   :  { %937 = vmatprep.subr.bf16.mxu0 %v1159_v0  ;;  %957 = vmatprep.subr.bf16.mxu1 %v1159_v0 }
  0x13   :  { %938 = vmatpush3.bf16.msra.mxu0 %v1269_v7  ;;  %958 = vmatpush3.bf16.msra.mxu1 %v1322_v14 }
  0x14   :  { %939 = vmatprep.subr.bf16.mxu0 %v1159_v0  ;;  %959 = vmatprep.subr.bf16.mxu1 %v1159_v0 }
  0x17   :  { %940 = vmatpush3.bf16.msra.mxu0 %v1278_v8  ;;  %960 = vmatpush3.bf16.msra.mxu1 %v1329_v15 }
  0x18   :  { %941 = vmatprep.subr.bf16.mxu0 %v1159_v0  ;;  %961 = vmatprep.subr.bf16.mxu1 %v1159_v0 }
  0x1b   :  { %942 = vmatpush3.bf16.msra.mxu0 %v1285_v9  ;;  %962 = vmatpush3.bf16.msra.mxu1 %v1336_v16 }
  0x1c   :  { %943 = vmatprep.subr.bf16.mxu0 %v1159_v0  ;;  %963 = vmatprep.subr.bf16.mxu1 %v1159_v0 }
  0x1f   :  { %944 = vmatpush3.bf16.msra.mxu0 %v1292_v10  ;;  %964 = vmatpush3.bf16.msra.mxu1 %v1343_v17 }
  0x20   :  { %969 = vmatprep.subr.bf16.mxu0 %v1159_v0  ;;  %989 = vmatprep.subr.bf16.mxu1 %v1159_v0 }
  0x22   :  { %946 = vmatmul.mubr.bf16.vlgmr.msra.gmra.mrb[0].mxu0 %v1297_v11 }
  0x23   :  { %985 = vmatprep.mubr.msk.bf16.mxu0 %vm1160_vm0, %v1159_v0  ;;  %970 = vmatpush3.bf16.msra.mxu0 %v1350_v18 }
  0x24   :  { %971 = vmatprep.subr.bf16.mxu0 %v1159_v0 }
  0x27   :  { %972 = vmatpush3.bf16.msra.mxu0 %v1356_v19 }
  0x28   :  { %973 = vmatprep.subr.bf16.mxu0 %v1159_v0 }
  0x2b   :  { %974 = vmatpush3.bf16.msra.mxu0 %v1363_v20 }
  0x2c   :  { %975 = vmatprep.subr.bf16.mxu0 %v1159_v0 }
  0x2f   :  { %976 = vmatpush3.bf16.msra.mxu0 %v1370_v21 }
  0x30   :  { %977 = vmatprep.subr.bf16.mxu0 %v1159_v0 }
  0x33   :  { %978 = vmatpush3.bf16.msra.mxu0 %v1377_v22 }
  0x34   :  { %979 = vmatprep.subr.bf16.mxu0 %v1159_v0 }
  0x37   :  { %980 = vmatpush3.bf16.msra.mxu0 %v1384_v23 }
  0x38   :  { %981 = vmatprep.subr.bf16.mxu0 %v1159_v0 }
  0x3b   :  { %982 = vmatpush3.bf16.msra.mxu0 %v1391_v24 }
  0x3c   :  { %983 = vmatprep.subr.bf16.mxu0 %v1159_v0 }
  0x3f   :  { %984 = vmatpush3.bf16.msra.mxu0 %v1115_v43 }
  0x40   :  { %1009 = vmatprep.subr.bf16.mxu0 %v1159_v0 }
  0xf5   :  { %v202_v26 = vpop.f32.mrb[0].mxu0 }
  0xf6   :  { %v203_v27 = vadd.f32 %v1399_v25, %v202_v26  ;;  %v947_v28 = vpop.f32.mrb[1].mxu0 }
  0xf7   :  { %v205_v29 = vpop.f32.mrb[2].mxu0 }
  0xf8   :  { %v211_v30 = vmin.f32 %v203_v27, 0.0  ;;  %v206_v31 = vadd.f32 %v1399_v25, %v205_v29  ;;  %v948_v32 = vpop.f32.mrb[3].mxu0  ;;  %vm209_vm1 = vcmp.gt.f32.partialorder %v203_v27, 0.0 }
  0xfa   :  { %v213_v33 = vmul.f32 1.442695, %v211_v30  ;;  %v212_v34 = vmin.f32 %v206_v31, 0.0  ;;  %vm210_vm2 = vcmp.gt.f32.partialorder %v206_v31, 0.0 }
  0xfc   :  { %1127 = vpow2.f32 %v213_v33  ;;  %v215_v35 = vmul.f32 1.442695, %v212_v34 }
  0xfe   :  { %1129 = vpow2.f32 %v215_v35 }
 0x106   :  { %v1128_v36 = vpop.eup %1127 }
 0x107   :  { %v811_v37 = vadd.f32 -1.0, %v1128_v36 }
 0x108   :  { %v1130_v38 = vpop.eup %1129 }
 0x109   :  { %v812_v39 = vadd.f32 -1.0, %v1130_v38  ;;  %v219_v40 = vsel %vm209_vm1, %v203_v27, %v811_v37 }
 0x10b   :  { %v220_v41 = vsel %vm210_vm2, %v206_v31, %v812_v39 }
 0x10c   :  { %v221_v42 = vpack.c.bf16 %v220_v41, %v219_v40 }
 0x10e   :  { %966 = vmatmul.mubr.bf16.vlgmr.msra.gmra.mrb[0].mxu1 %v221_v42  ;;  %v527_v42 = vunpack.c.h.bf16 %v1297_v11 }
 0x10f   :  { %1005 = vmatprep.mubr.msk.bf16.mxu1 %vm1160_vm0, %v1159_v0  ;;  %990 = vmatpush3.bf16.msra.mxu1 %v1412_v44 }
 0x110   :  { %991 = vmatprep.subr.bf16.mxu1 %v1159_v0 }
 0x113   :  { %992 = vmatpush3.bf16.msra.mxu1 %v1418_v45 }
 0x114   :  { %993 = vmatprep.subr.bf16.mxu1 %v1159_v0 }
 0x117   :  { %994 = vmatpush3.bf16.msra.mxu1 %v1491_v58 }
 0x118   :  { %995 = vmatprep.subr.bf16.mxu1 %v1159_v0 }
 0x11b   :  { %996 = vmatpush3.bf16.msra.mxu1 %v1498_v59 }
 0x11c   :  { %997 = vmatprep.subr.bf16.mxu1 %v1159_v0 }
 0x11f   :  { %998 = vmatpush3.bf16.msra.mxu1 %v1505_v60 }
 0x120   :  { %999 = vmatprep.subr.bf16.mxu1 %v1159_v0 }
 0x123   :  { %1000 = vmatpush3.bf16.msra.mxu1 %v1512_v61 }
 0x124   :  { %1001 = vmatprep.subr.bf16.mxu1 %v1159_v0 }
 0x127   :  { %1002 = vmatpush3.bf16.msra.mxu1 %v1519_v62 }
 0x128   :  { %1003 = vmatprep.subr.bf16.mxu1 %v1159_v0 }
 0x12b   :  { %1004 = vmatpush3.bf16.msra.mxu1 %v1526_v63 }
 0x12c   :  { %1029 = vmatprep.subr.bf16.mxu1 %v1159_v0 }
 0x1e1   :  { %v310_v49 = vpop.f32.mrb[0].mxu1 }
 0x1e2   :  { %v967_v50 = vpop.f32.mrb[1].mxu1  ;;  %v1431_v52 = vadd.f32 %v1428_v48, %v310_v49 }
 0x1e3   :  { %v313_v51 = vpop.f32.mrb[2].mxu1 }
 0x1e4   :  { %v1434_v53 = vadd.f32 %v1428_v48, %v313_v51  ;;  %v968_v54 = vpop.f32.mrb[3].mxu1 }
 0x1e6   :  { %v832_v56 = vpack.c.bf16 %v1434_v53, %v1431_v52 }
 0x1e8   :  { %986 = vmatmul.mubr.msk.bf16.vlgmr.msra.gmra.mrb[4].mxu0 %vm1440_vm4, %v832_v56 }
 0x1e9   :  { %1010 = vmatpush3.bf16.msra.mxu0 %v1225_v1  ;;  %1025 = vmatprep.mubr.msk.bf16.mxu0 %vm1160_vm0, %v1159_v0  ;;  %v1533_v1 = vld [vmem:[%s1653_s7] ss:$0 sm:$0xff] }
 0x1ea   :  { %1011 = vmatprep.subr.bf16.mxu0 %v1159_v0 }
 0x1ed   :  { %1012 = vmatpush3.bf16.msra.mxu0 %v1236_v2 }
 0x1ee   :  { %1013 = vmatprep.subr.bf16.mxu0 %v1159_v0 }
 0x1f1   :  { %1014 = vmatpush3.bf16.msra.mxu0 %v1243_v3 }
 0x1f2   :  { %1015 = vmatprep.subr.bf16.mxu0 %v1159_v0 }
 0x1f5   :  { %1016 = vmatpush3.bf16.msra.mxu0 %v1255_v5 }
 0x1f6   :  { %1017 = vmatprep.subr.bf16.mxu0 %v1159_v0 }
 0x1f9   :  { %1018 = vmatpush3.bf16.msra.mxu0 %v1269_v7 }
 0x1fa   :  { %1019 = vmatprep.subr.bf16.mxu0 %v1159_v0 }
 0x1fd   :  { %1020 = vmatpush3.bf16.msra.mxu0 %v1278_v8 }
 0x1fe   :  { %1021 = vmatprep.subr.bf16.mxu0 %v1159_v0 }
 0x201   :  { %1022 = vmatpush3.bf16.msra.mxu0 %v1285_v9 }
 0x202   :  { %1023 = vmatprep.subr.bf16.mxu0 %v1159_v0 }
 0x205   :  { %1024 = vmatpush3.bf16.msra.mxu0 %v1292_v10 }
 0x206   :  { %1049 = vmatprep.subr.bf16.mxu0 %v1159_v0 }
 0x208   :  { %1026 = vmatmul.mubr.bf16.vlgmr.msra.gmra.mrb[8].mxu0 %v1466_v57 }
 0x209   :  { %1050 = vmatpush3.bf16.msra.mxu0 %v1350_v18  ;;  %1065 = vmatprep.mubr.msk.bf16.mxu0 %vm1160_vm0, %v1159_v0 }
 0x20a   :  { %1051 = vmatprep.subr.bf16.mxu0 %v1159_v0 }
 0x20d   :  { %1052 = vmatpush3.bf16.msra.mxu0 %v1356_v19 }
 0x20e   :  { %1053 = vmatprep.subr.bf16.mxu0 %v1159_v0 }
 0x211   :  { %1054 = vmatpush3.bf16.msra.mxu0 %v1363_v20 }
 0x212   :  { %1055 = vmatprep.subr.bf16.mxu0 %v1159_v0 }
 0x215   :  { %1056 = vmatpush3.bf16.msra.mxu0 %v1370_v21 }
 0x216   :  { %1057 = vmatprep.subr.bf16.mxu0 %v1159_v0 }
 0x219   :  { %1058 = vmatpush3.bf16.msra.mxu0 %v1377_v22 }
 0x21a   :  { %1059 = vmatprep.subr.bf16.mxu0 %v1159_v0 }
 0x21d   :  { %1060 = vmatpush3.bf16.msra.mxu0 %v1384_v23 }
 0x21e   :  { %1061 = vmatprep.subr.bf16.mxu0 %v1159_v0 }
 0x221   :  { %1062 = vmatpush3.bf16.msra.mxu0 %v1391_v24 }
 0x222   :  { %1063 = vmatprep.subr.bf16.mxu0 %v1159_v0 }
 0x225   :  { %1064 = vmatpush3.bf16.msra.mxu0 %v1115_v43 }
 0x2bb   :  { %v411_v2 = vpop.f32.mrb[4].mxu0 }
 0x2bc   :  { %v412_v3 = vadd.f32 %v1533_v1, %v411_v2  ;;  %v987_v5 = vpop.f32.mrb[5].mxu0 }
 0x2bd   :  { %v414_v7 = vpop.f32.mrb[6].mxu0 }
 0x2be   :  { %v420_v8 = vmin.f32 %v412_v3, 0.0  ;;  %v415_v9 = vadd.f32 %v1533_v1, %v414_v7  ;;  %v988_v10 = vpop.f32.mrb[7].mxu0  ;;  %vm418_vm5 = vcmp.gt.f32.partialorder %v412_v3, 0.0 }
 0x2c0   :  { %v422_v18 = vmul.f32 1.442695, %v420_v8  ;;  %v421_v19 = vmin.f32 %v415_v9, 0.0  ;;  %vm419_vm6 = vcmp.gt.f32.partialorder %v415_v9, 0.0  ;;  %v320_v8 = vsel %vm319_vm3, %v1431_v52, 0.0 }
 0x2c2   :  { %1131 = vpow2.f32 %v422_v18  ;;  %v424_v20 = vmul.f32 1.442695, %v421_v19 }
 0x2c4   :  { %1133 = vpow2.f32 %v424_v20 }
 0x2cc   :  { %v1132_v21 = vpop.eup %1131 }
 0x2cd   :  { %v834_v22 = vadd.f32 -1.0, %v1132_v21  ;;  %v321_v21 = vsel %vm319_vm3, %v1434_v53, 0.0 }
 0x2ce   :  { %v1134_v23 = vpop.eup %1133 }
 0x2cf   :  { %v835_v24 = vadd.f32 -1.0, %v1134_v23  ;;  %v428_v26 = vsel %vm418_vm5, %v412_v3, %v834_v22 }
 0x2d1   :  { %v429_v27 = vsel %vm419_vm6, %v415_v9, %v835_v24 }
 0x2d2   :  { %v430_v28 = vpack.c.bf16 %v429_v27, %v428_v26 }
 0x2d4   :  { %1006 = vmatmul.mubr.bf16.vlgmr.msra.gmra.mrb[4].mxu1 %v430_v28 }
 0x2d5   :  { %1030 = vmatpush3.bf16.msra.mxu1 %v1249_v4  ;;  %1045 = vmatprep.mubr.msk.bf16.mxu1 %vm1160_vm0, %v1159_v0 }
 0x2d6   :  { %1031 = vmatprep.subr.bf16.mxu1 %v1159_v0 }
 0x2d9   :  { %1032 = vmatpush3.bf16.msra.mxu1 %v1260_v6 }
 0x2da   :  { %1033 = vmatprep.subr.bf16.mxu1 %v1159_v0 }
 0x2db   :  { %v602_v29 = vpop.f32.mrb[8].mxu0 }
 0x2dc   :  { %v603_v30 = vadd.f32 %v1399_v25, %v602_v29  ;;  %v1027_v31 = vpop.f32.mrb[9].mxu0 }
 0x2dd   :  { %v605_v32 = vpop.f32.mrb[10].mxu0  ;;  %1034 = vmatpush3.bf16.msra.mxu1 %v1308_v12 }
 0x2de   :  { %v611_v33 = vmin.f32 %v603_v30, 0.0  ;;  %v606_v34 = vadd.f32 %v1399_v25, %v605_v32  ;;  %v1028_v4 = vpop.f32.mrb[11].mxu0  ;;  %1035 = vmatprep.subr.bf16.mxu1 %v1159_v0  ;;  %vm609_vm7 = vcmp.gt.f32.partialorder %v603_v30, 0.0 }
 0x2e0   :  { %v613_v35 = vmul.f32 1.442695, %v611_v33  ;;  %v612_v36 = vmin.f32 %v606_v34, 0.0  ;;  %vm610_vm8 = vcmp.gt.f32.partialorder %v606_v34, 0.0 }
 0x2e1   :  { %1036 = vmatpush3.bf16.msra.mxu1 %v1315_v13 }
 0x2e2   :  { %1135 = vpow2.f32 %v613_v35  ;;  %v615_v6 = vmul.f32 1.442695, %v612_v36  ;;  %1037 = vmatprep.subr.bf16.mxu1 %v1159_v0 }
 0x2e4   :  { %1137 = vpow2.f32 %v615_v6 }
 0x2e5   :  { %1038 = vmatpush3.bf16.msra.mxu1 %v1322_v14 }
 0x2e6   :  { %1039 = vmatprep.subr.bf16.mxu1 %v1159_v0 }
 0x2e9   :  { %1040 = vmatpush3.bf16.msra.mxu1 %v1329_v15  ;;  %v1577_v15 = vld [vmem:[%s1654_s9] ss:$0 sm:$0xff] }
 0x2ea   :  { %1041 = vmatprep.subr.bf16.mxu1 %v1159_v0 }
 0x2ec   :  { %v1136_v12 = vpop.eup %1135 }
 0x2ed   :  { %v848_v25 = vadd.f32 -1.0, %v1136_v12  ;;  %1042 = vmatpush3.bf16.msra.mxu1 %v1336_v16  ;;  %v526_v16 = vunpack.c.l.bf16 %v1297_v11 }
 0x2ee   :  { %v1138_v37 = vpop.eup %1137  ;;  %1043 = vmatprep.subr.bf16.mxu1 %v1159_v0 }
 0x2ef   :  { %v849_v13 = vadd.f32 -1.0, %v1138_v37  ;;  %v619_v38 = vsel %vm609_vm7, %v603_v30, %v848_v25 }
 0x2f1   :  { %v620_v39 = vsel %vm610_vm8, %v606_v34, %v849_v13  ;;  %1044 = vmatpush3.bf16.msra.mxu1 %v1343_v17  ;;  %v761_v13 = vunpack.c.l.bf16 %v1466_v57 }
 0x2f2   :  { %v621_v14 = vpack.c.bf16 %v620_v39, %v619_v38  ;;  %1069 = vmatprep.subr.bf16.mxu1 %v1159_v0 }
 0x2f4   :  { %1046 = vmatmul.mubr.bf16.vlgmr.msra.gmra.mrb[8].mxu1 %v621_v14  ;;  %v762_v14 = vunpack.c.h.bf16 %v1466_v57 }
 0x2f5   :  { %1070 = vmatpush3.bf16.msra.mxu1 %v1412_v44  ;;  %1085 = vmatprep.mubr.msk.bf16.mxu1 %vm1160_vm0, %v1159_v0 }
 0x2f6   :  { %1071 = vmatprep.subr.bf16.mxu1 %v1159_v0 }
 0x2f9   :  { %1072 = vmatpush3.bf16.msra.mxu1 %v1418_v45 }
 0x2fa   :  { %1073 = vmatprep.subr.bf16.mxu1 %v1159_v0 }
 0x2fd   :  { %1074 = vmatpush3.bf16.msra.mxu1 %v1491_v58 }
 0x2fe   :  { %1075 = vmatprep.subr.bf16.mxu1 %v1159_v0 }
 0x301   :  { %1076 = vmatpush3.bf16.msra.mxu1 %v1498_v59 }
 0x302   :  { %1077 = vmatprep.subr.bf16.mxu1 %v1159_v0 }
 0x305   :  { %1078 = vmatpush3.bf16.msra.mxu1 %v1505_v60 }
 0x306   :  { %1079 = vmatprep.subr.bf16.mxu1 %v1159_v0 }
 0x309   :  { %1080 = vmatpush3.bf16.msra.mxu1 %v1512_v61  ;;  %v845_v61 = vmul.f32 -1.442695, %v1431_v52 }
 0x30a   :  { %1081 = vmatprep.subr.bf16.mxu1 %v1159_v0 }
 0x30b   :  { %1139 = vpow2.f32 %v845_v61 }
 0x30d   :  { %1082 = vmatpush3.bf16.msra.mxu1 %v1519_v62  ;;  %v846_v62 = vmul.f32 -1.442695, %v1434_v53 }
 0x30e   :  { %1083 = vmatprep.subr.bf16.mxu1 %v1159_v0 }
 0x30f   :  { %1141 = vpow2.f32 %v846_v62 }
 0x311   :  { %1084 = vmatpush3.bf16.msra.mxu1 %v1526_v63 }
 0x315   :  { %v1140_v63 = vpop.eup %1139 }
 0x316   :  { %v543_v2 = vadd.f32 1.0, %v1140_v63 }
 0x318   :  { %1143 = vrcp.f32 %v543_v2 }
 0x319   :  { %v1142_v3 = vpop.eup %1141 }
 0x31a   :  { %v544_v5 = vadd.f32 1.0, %v1142_v3 }
 0x31c   :  { %1145 = vrcp.f32 %v544_v5 }
 0x3a7   :  { %v519_v17 = vpop.f32.mrb[4].mxu1 }
 0x3a8   :  { %v520_v40 = vadd.f32 %v1577_v15, %v519_v17  ;;  %v1007_v41 = vpop.f32.mrb[5].mxu1 }
 0x3a9   :  { %v522_v43 = vpop.f32.mrb[6].mxu1 }
 0x3aa   :  { %v523_v44 = vadd.f32 %v1577_v15, %v522_v43  ;;  %v1008_v45 = vpop.f32.mrb[7].mxu1  ;;  %v528_v0 = vsub.f32 %v526_v16, %v520_v40 }
 0x3ac   :  { %v530_v46 = vmul.f32 %v528_v0, %v528_v0  ;;  %v529_v49 = vsub.f32 %v527_v42, %v523_v44 }
 0x3ae   :  { %532 = vadd.xlane.f32.xlu0 %v530_v46  ;;  %v531_v50 = vmul.f32 %v529_v49, %v529_v49 }
 0x3b2   :  { %534 = vadd.xlane.f32.xlu0 %v531_v50 }
 0x3c7   :  { %v656_v51 = vpop.f32.mrb[8].mxu1 }
 0x3c8   :  { %v1047_v54 = vpop.f32.mrb[9].mxu1  ;;  %v1584_v58 = vadd.f32 %v1428_v48, %v656_v51 }
 0x3c9   :  { %v659_v56 = vpop.f32.mrb[10].mxu1 }
 0x3ca   :  { %v1587_v59 = vadd.f32 %v1428_v48, %v659_v56  ;;  %v1048_v11 = vpop.f32.mrb[11].mxu1  ;;  %v1144_v48 = vpop.eup %1143  ;;  %v855_v45 = vmul.f32 -1.442695, %v1584_v58  ;;  %v663_v56 = vsel %vm319_vm3, %v1584_v58, 0.0 }
 0x3cb   :  { %v549_v7 = vsel %vm536_vm9, %v1144_v48, 0.0  ;;  %v1146_v55 = vpop.eup %1145 }
 0x3cc   :  { %v851_v60 = vpack.c.bf16 %v1587_v59, %v1584_v58  ;;  %v554_v9 = vadd.f32 %v549_v7, %v320_v8  ;;  %v550_v19 = vsel %vm536_vm9, %v1146_v55, 0.0  ;;  %v856_v0 = vmul.f32 -1.442695, %v1587_v59 }
 0x3cd   :  { %v555_v22 = vadd.f32 %v550_v19, %v321_v21  ;;  %v664_v2 = vsel %vm319_vm3, %v1587_v59, 0.0 }
 0x3ce   :  { %1066 = vmatmul.mubr.msk.bf16.vlgmr.msra.gmra.mrb[12].mxu0 %vm1440_vm4, %v851_v60 }
 0x43b   :  { %v533_v10 = vpop.xlane.xlu0 %532 }
 0x43c   :  { %v552_v18 = vsel %vm551_vm10, %v533_v10, 0.0 }
 0x43d   :  { %v556_v20 = vadd.f32 %v554_v9, %v552_v18 }
 0x43f   :  { %558 = vst [vmem:[%s1655_s10] sm:$0xff] %v556_v20  ;;  %v535_v23 = vpop.xlane.xlu0 %534 }
 0x440   :  { %v553_v52 = vsel %vm551_vm10, %v535_v23, 0.0 }
 0x441   :  { %v557_v24 = vadd.f32 %v555_v22, %v553_v52 }
 0x443   :  { %559 = vst [vmem:[%s1655_s10 + $0x8] sm:$0xff] %v557_v24 }
 0x4a1   :  { %v700_v26 = vpop.f32.mrb[12].mxu0 }
 0x4a2   :  { %v701_v27 = vadd.f32 %v1533_v1, %v700_v26  ;;  %v1067_v28 = vpop.f32.mrb[13].mxu0 }
 0x4a3   :  { %v703_v29 = vpop.f32.mrb[14].mxu0 }
 0x4a4   :  { %v709_v53 = vmin.f32 %v701_v27, 0.0  ;;  %v704_v30 = vadd.f32 %v1533_v1, %v703_v29  ;;  %v1068_v31 = vpop.f32.mrb[15].mxu0  ;;  %vm707_vm11 = vcmp.gt.f32.partialorder %v701_v27, 0.0 }
 0x4a6   :  { %v711_v32 = vmul.f32 1.442695, %v709_v53  ;;  %v710_v33 = vmin.f32 %v704_v30, 0.0  ;;  %vm708_vm12 = vcmp.gt.f32.partialorder %v704_v30, 0.0 }
 0x4a8   :  { %1147 = vpow2.f32 %v711_v32  ;;  %v713_v34 = vmul.f32 1.442695, %v710_v33 }
 0x4aa   :  { %1149 = vpow2.f32 %v713_v34 }
 0x4ab   :  { %1151 = vpow2.f32 %v855_v45 }
 0x4ac   :  { %1153 = vpow2.f32 %v856_v0 }
 0x4b2   :  { %v1148_v4 = vpop.eup %1147 }
 0x4b3   :  { %v853_v35 = vadd.f32 -1.0, %v1148_v4 }
 0x4b4   :  { %v1150_v36 = vpop.eup %1149 }
 0x4b5   :  { %v854_v6 = vadd.f32 -1.0, %v1150_v36  ;;  %v717_v12 = vsel %vm707_vm11, %v701_v27, %v853_v35  ;;  %v1152_v46 = vpop.eup %1151 }
 0x4b6   :  { %v777_v49 = vadd.f32 1.0, %v1152_v46  ;;  %v1154_v50 = vpop.eup %1153 }
 0x4b7   :  { %v718_v25 = vsel %vm708_vm12, %v704_v30, %v854_v6  ;;  %v778_v57 = vadd.f32 1.0, %v1154_v50 }
 0x4b8   :  { %v719_v37 = vpack.c.bf16 %v718_v25, %v717_v12  ;;  %1155 = vrcp.f32 %v777_v49 }
 0x4b9   :  { %1157 = vrcp.f32 %v778_v57 }
 0x4ba   :  { %1086 = vmatmul.mubr.bf16.vlgmr.msra.gmra.mrb[12].mxu1 %v719_v37 }
 0x58d   :  { %v754_v38 = vpop.f32.mrb[12].mxu1 }
 0x58e   :  { %v755_v1 = vadd.f32 %v1577_v15, %v754_v38  ;;  %v1087_v39 = vpop.f32.mrb[13].mxu1 }
 0x58f   :  { %v757_v16 = vpop.f32.mrb[14].mxu1 }
 0x590   :  { %v758_v17 = vadd.f32 %v1577_v15, %v757_v16  ;;  %v1088_v40 = vpop.f32.mrb[15].mxu1  ;;  %v763_v41 = vsub.f32 %v761_v13, %v755_v1  ;;  %v1156_v15 = vpop.eup %1155 }
 0x591   :  { %v783_v51 = vsel %vm536_vm9, %v1156_v15, 0.0  ;;  %v1158_v54 = vpop.eup %1157 }
 0x592   :  { %v765_v42 = vmul.f32 %v763_v41, %v763_v41  ;;  %v764_v43 = vsub.f32 %v762_v14, %v758_v17  ;;  %v787_v11 = vadd.f32 %v783_v51, %v663_v56  ;;  %v784_v62 = vsel %vm536_vm9, %v1158_v54, 0.0 }
 0x593   :  { %v788_v3 = vadd.f32 %v784_v62, %v664_v2 }
 0x594   :  { %767 = vadd.xlane.f32.xlu1 %v765_v42  ;;  %v766_v44 = vmul.f32 %v764_v43, %v764_v43 }
 0x598   :  { %769 = vadd.xlane.f32.xlu1 %v766_v44 }
 0x621   :  { %v768_v60 = vpop.xlane.xlu1 %767 }
 0x622   :  { %v785_v61 = vsel %vm551_vm10, %v768_v60, 0.0 }
 0x623   :  { %v789_v63 = vadd.f32 %v787_v11, %v785_v61 }
 0x625   :  { %791 = vst [vmem:[%s1656_s11] sm:$0xff] %v789_v63  ;;  %v770_v5 = vpop.xlane.xlu1 %769 }
 0x626   :  { %v786_v58 = vsel %vm551_vm10, %v770_v5, 0.0 }
 0x627   :  { %v790_v48 = vadd.f32 %v788_v3, %v786_v58 }
 0x629   :  { %792 = vst [vmem:[%s1656_s11 + $0x8] sm:$0xff] %v790_v48 }

// kernel: _tnode_forward.3
= control target key start
LH: loop header
LB: loop body
LE: loop exit
PB: predicated region body
PF: predicated region fallthrough
CT: control target
= control target key end

     0   :  { %s2096_s0 = inlined_call_operand.vmem [shape: s32[2], index: 0, kind: input, shape index: {}]   ;;  %s2097_s3 = inlined_call_operand.vmem [shape: f32[2,1,128], index: 3, kind: input, shape index: {}]   ;;  %s2098_s4 = inlined_call_operand.vmem [shape: f32[2,32,128], index: 4, kind: input, shape index: {}]   ;;  %s2099_s5 = inlined_call_operand.vmem [shape: f32[2,32,1], index: 5, kind: input, shape index: {}]   ;;  %s2100_s6 = inlined_call_operand.vmem [shape: f32[2,32,128], index: 6, kind: input, shape index: {}]   ;;  %s2101_s7 = inlined_call_operand.vmem [shape: f32[2,1,128], index: 7, kind: input, shape index: {}]   ;;  %s2102_s8 = inlined_call_operand.vmem [shape: f32[24,128], index: 8, kind: input, shape index: {}]   ;;  %s2103_s9 = inlined_call_operand.vmem [shape: f32[16,128], index: 9, kind: output, shape index: {}]   ;;  %s2104_s1 = inlined_call_operand.vmem [shape: s32[2], index: 1, kind: input, shape index: {}]   ;;  %s2105_s2 = inlined_call_operand.vmem [shape: f32[24], index: 2, kind: input, shape index: {}]  }
   0x1   :  { %s14_s11 = sshll.u32 %s2096_s0, 4  ;;  %s18_s14 = sshll.u32 %s2104_s1, 4  ;;  %s15_s11 = int_to_ptr.vmem [resolvable:$true] %s14_s11  ;;  %s19_s14 = int_to_ptr.vmem [resolvable:$true] %s18_s14 }
   0x2   :  { %s1601_s15 = scalar_lea.vmem %s15_s11, 16  ;;  %p1606_p1 = scmp.lt.s32.totalorder %s15_s11, %s15_s11 }
   0x3   :  { %p1602_p0 = scmp.ne.s32.totalorder %s15_s11, %s1601_s15  ;;  %p1607_p2 = scmp.lt.s32.totalorder %s1601_s15, %s1601_s15 }
   0x5   :  { %p1608_p3 = por %p1607_p2, %p1606_p1 }
   0x7   :  { %p1609_p4 = pnand %p1608_p3, %p1602_p0 }
   0x9   :  { %1612 = shalt.err (!%p1609_p4)  }
   0xa   :  { %s1681_s16 = smov [#allocation5]   ;;  %s1613_s17 = scalar_lea.vmem %s19_s14, 16 }
   0xb   :  { %17 = dma.vmem_to_smem %s15_s11, 16, %s1681_s16, [#allocation4] }
   0xc   :  { %p1614_p5 = scmp.ne.s32.totalorder %s19_s14, %s1613_s17  ;;  %p1618_p6 = scmp.lt.s32.totalorder %s19_s14, %s19_s14 }
   0xd   :  { %p1619_p7 = scmp.lt.s32.totalorder %s1613_s17, %s1613_s17 }
   0xf   :  { %p1620_p8 = por %p1619_p7, %p1618_p6 }
  0x11   :  { %p1621_p9 = pnand %p1620_p8, %p1614_p5 }
  0x13   :  { %1624 = shalt.err (!%p1621_p9)  }
  0x14   :  { %s1682_s0 = smov [#allocation6]   ;;  %s22_s19 = sshll.u32 %s2105_s2, 4  ;;  %s23_s19 = int_to_ptr.vmem [resolvable:$true] %s22_s19 }
  0x15   :  { %21 = dma.vmem_to_smem %s19_s14, 16, %s1682_s0, [#allocation4] }
  0x16   :  { %s1625_s20 = scalar_lea.vmem %s23_s19, 16  ;;  %p1630_p11 = scmp.lt.s32.totalorder %s23_s19, %s23_s19 }
  0x17   :  { %p1626_p10 = scmp.ne.s32.totalorder %s23_s19, %s1625_s20  ;;  %p1631_p12 = scmp.lt.s32.totalorder %s1625_s20, %s1625_s20 }
  0x19   :  { %p1632_p13 = por %p1631_p12, %p1630_p11 }
  0x1b   :  { %p1633_p0 = pnand %p1632_p13, %p1626_p10 }
  0x1d   :  { %1636 = shalt.err (!%p1633_p0)  }
  0x1e   :  { %s1683_s21 = smov [#allocation7]  }
  0x1f   :  { %25 = dma.vmem_to_smem %s23_s19, 16, %s1683_s21, [#allocation4] }
  0x20   :  { %1657 = dma.done.wait [#allocation4], 48 }
  0x21   :  { %1658 = vsyncadd [#allocation4], 4294967248 }
  0x22   :  { %27 = sfence }
  0x23   :  { %s1744_s22 = smov 0  }
  0x24 LB: > { %s1413_s2 = sadd.s32 4294967295, %s1663_s22   ;;  %p1417_p1 = scmp.ge.s32.totalorder %s1663_s22, 1  ;;  %s1663_s22 = sphi %s1744_s22, %s33_s22  }
  0x25   : > { %p241_p2 = scmp.lt.s32.totalorder %s1663_s22, 3 }
  0x27   : > { %p242_p3 = pnand %p1417_p1, %p241_p2 }
  0x28   : > { %p284_p4 = scmp.lt.s32.totalorder (!%p242_p3), %s1413_s2, 1  ;;  %s1752_s23 = sld [smem:[#allocation5 + %s1413_s2]] (!%p242_p3) }
  0x29   : > { %245 = sbr.rel (%p242_p3) target bundleno = 2699 (0xa8b), region = 40  ;;  %s1754_s24 = sld [smem:[#allocation6 + %s1413_s2]] (!%p242_p3) }
  0x2f   : > { %s324_s19 = sadd.s32 (!%p242_p3), 7, %s1754_s24 }
  0x30   : > { %s2113_s2 = smov (!%p284_p4, %s1413_s2), 1  ;;  %p325_p5 = scmp.lt.s32.totalorder %s324_s19, 0 }
  0x31   : > { %s286_s27 = scalar_lea.vmem %s2097_s3, %s2113_s2  ;;  %s1488_s28 = sshll.u32 %s2113_s2, 5 }
  0x32   : > { %s291_s10 = scalar_lea.vmem %s2098_s4, %s1488_s28  ;;  %s296_s13 = scalar_lea.vmem %s2099_s5, %s1488_s28 }
  0x33   : > { %s301_s16 = scalar_lea.vmem %s2100_s6, %s1488_s28  ;;  %s304_s1 = scalar_lea.vmem %s2101_s7, %s2113_s2  ;;  %v1776_v0 = vld [vmem:[%s291_s10] sm:$0xff]  ;;  %v1778_v1 = vld [vmem:[%s291_s10 + $0x8] sm:$0xff]  ;;  %v1780_v2 = vld [vmem:[%s291_s10 + $0x10] sm:$0xff] }
  0x34   : > { %s1424_s18 = sshll.u32 %s2113_s2, 3  ;;  %v1783_v3 = vld [vmem:[%s291_s10 + $0x18] sm:$0xff]  ;;  %v1785_v4 = vld [vmem:[%s296_s13] sm:$0xff]  ;;  %v1787_v5 = vld [vmem:[%s296_s13 + $0x8] sm:$0xff]  ;;  %s326_s26 = ssub.s32 0, %s324_s19 }
  0x35   : > { %s1793_s25 = scalar_lea.vmem %s2103_s9, %s1424_s18  ;;  %v1795_v6 = vld [vmem:[%s296_s13 + $0x10] sm:$0xff]  ;;  %v1797_v7 = vld [vmem:[%s296_s13 + $0x18] sm:$0xff]  ;;  %v1799_v8 = vld [vmem:[%s301_s16] sm:$0xff]  ;;  %s1425_s28 = smin.u32 %s326_s26, %s324_s19 }
  0x36   : > { %v1801_v9 = vld [vmem:[%s301_s16 + $0x8] sm:$0xff]  ;;  %v1803_v10 = vld [vmem:[%s301_s16 + $0x10] sm:$0xff]  ;;  %v1805_v11 = vld [vmem:[%s301_s16 + $0x18] sm:$0xff]  ;;  %s328_s29 = sshrl.u32 %s1425_s28, 3 }
  0x37   : > { %v1807_v12 = vld [vmem:[%s304_s1] sm:$0x1]  ;;  %s329_s30 = ssub.s32 0, %s328_s29 }
  0x38   : > { %s2115_s30 = smov (!%p325_p5, %s329_s30), %s328_s29 }
  0x39   : > { %p1426_p6 = scmp.le.s32.totalorder %s2115_s30, 0 }
  0x3a   : > { %s335_s12 = scalar_lea.vmem (!%p1426_p6), %s2102_s8, %s1752_s23 }
  0x3b   : > { %334 = sbr.rel (%p1426_p6) target bundleno = 67 (0x43), region = 44  ;;  %v368_v13 = vld [vmem:[%s335_s12] sm:$0xff] (!%p1426_p6) }
  0x3c   : > { %369 = vst [vmem:[#allocation2] sm:$0xff] (!%p1426_p6), %v368_v13 }
  0x42   : > { %377 = vsyncadd [#allocation3], 128 }
  0x43 PF: > { %v378_v14 = vld [vmem:[%s286_s27] sm:$0x1]   ;;  %v1821_v15 = vmov 0.0   ;;  %1362 = sbr.rel (%p1426_p6) target bundleno = 2690 (0xa82), region = 189  ;;  %v1823_v16 = vmov (!%p1426_p6), 0.0   ;;  %s1827_s15 = smov (!%p1426_p6), 0  }
  0x4a LB: >> { %p387_p7 = scmp.lt.s32.totalorder %s1675_s15, 0  ;;  %s388_s2 = ssub.s32 0, %s1675_s15  ;;  %s1675_s15 = sphi %s1827_s15, %s2110_s15   ;;  %v1671_v14 = vphi %v378_v14, %v1240_v14   ;;  %v1667_v16 = vphi %v1823_v16, %v2109_v16  }
  0x4b   : >> { %s1428_s27 = smin.u32 %s1675_s15, %s388_s2  ;;  %s1842_s16 = sshll.u32 %s1675_s15, 3 }
  0x4c   : >> { %s390_s17 = sand.u32 1, %s1428_s27   ;;  %s1846_s0 = sadd.s32 %s1842_s16, %s1752_s23 }
  0x4d   : >> { %s391_s1 = ssub.s32 0, %s390_s17 }
  0x4e   : >> { %s2117_s1 = smov (!%p387_p7, %s391_s1), %s390_s17 }
  0x4f   : >> { %p1430_p8 = scmp.lt.s32.totalorder %s2117_s1, 0  ;;  %s397_s18 = sadd.s32 2, %s2117_s1 }
  0x51   : >> { %s2119_s18 = smov (!%p1430_p8, %s397_s18), %s2117_s1 }
  0x52   : >> { %s1432_s19 = sshll.u32 %s2119_s18, 3  ;;  %s402_s20 = scalar_lea.sflag [#allocation3], %s2119_s18 }
  0x53   : >> { %1659 = dma.done.wait %s402_s20, 128 }
  0x54   : >> { %1660 = vsyncadd %s402_s20, 4294967168  ;;  %s406_s21 = sadd.s32 1, %s1675_s15  }
  0x55   : >> { %p1856_p9 = scmp.ge.s32.totalorder %s406_s21, %s2115_s30 }
  0x56   : >> { %s411_s28 = ssub.s32 (!%p1856_p9), 1, %s2119_s18  ;;  %s1310_s11 = scalar_lea.vmem (!%p1856_p9), %s2102_s8, %s1846_s0 }
  0x57   : >> { %410 = sbr.rel (%p1856_p9) target bundleno = 95 (0x5f), region = 89  ;;  %s1434_s12 = sshll.u32 (!%p1856_p9), %s411_s28, 3  ;;  %v1436_v17 = vld [vmem:[%s1310_s11 + $0x8] sm:$0xff] (!%p1856_p9) }
  0x58   : >> { %s416_s13 = scalar_lea.vmem (!%p1856_p9), [#allocation2], %s1434_s12  ;;  %s417_s14 = scalar_lea.sflag (!%p1856_p9), [#allocation3], %s411_s28 }
  0x59   : >> { %451 = vst [vmem:[%s416_s13] sm:$0xff] (!%p1856_p9), %v1436_v17 }
  0x5e   : >> { %459 = vsyncadd %s417_s14, 128 }
  0x5f PF: >> { %v462_v18 = vlaneseq  ;;  %v1684_v26 = vmov 0   ;;  %s550_s2 = sld [smem:[#allocation7 + %s1846_s0]]  ;;  %p460_p10 = scmp.lt.s32.totalorder %s1842_s16, %s1754_s24 }
  0x60   : >> { %1535 = vset.pattern.permute.xlu0 %v1684_v26  ;;  %1536 = vset.pattern.permute.xlu1 %v1684_v26  ;;  %s1888_s17 = scalar_lea.vmem [#allocation2], %s1432_s19  ;;  %s555_s0 = sadd.s32 1, %s1842_s16 }
  0x61   : >> { %v463_v19 = vshrl.u32 %v462_v18, 7  ;;  %s545_s27 = scalar_select %p460_p10, 1, 0 }
  0x62   : >> { %s647_s1 = sadd.s32 %s555_s0, %s1752_s23  ;;  %p556_p11 = scmp.lt.s32.totalorder %s555_s0, %s1754_s24 }
  0x63   : >> { %v1867_v20 = vsub.s32 0, %v463_v19  ;;  %s648_s18 = sld [smem:[#allocation7 + %s647_s1]]  ;;  %s653_s20 = sadd.s32 2, %s1842_s16 }
  0x64   : >> { %s642_s19 = scalar_select %p556_p11, 1, 0 }
  0x65   : >> { %v465_v21 = vrot.slane %v1671_v14, %v1867_v20  ;;  %s2121_s2 = smov (!%p460_p10, %s550_s2), 0.0  ;;  %s745_s28 = sadd.s32 %s653_s20, %s1752_s23 }
  0x66   : >> { %s746_s29 = sld [smem:[#allocation7 + %s745_s28]]  ;;  %p654_p12 = scmp.lt.s32.totalorder %s653_s20, %s1754_s24 }
  0x67   : >> { %v469_v22 = vmul.f32 %v465_v21, %v1780_v2  ;;  %v467_v23 = vmul.f32 %v465_v21, %v1776_v0  ;;  %v470_v24 = vmul.f32 %v465_v21, %v1783_v3  ;;  %v468_v25 = vmul.f32 %v465_v21, %v1778_v1  ;;  %s751_s11 = sadd.s32 3, %s1842_s16  ;;  %s2110_s15 = smov %s406_s21 }
  0x68   : >> { %s740_s10 = scalar_select %p654_p12, 1, 0 }
  0x69   : >> { %475 = vadd.xlane.f32.xlu1 %v469_v22  ;;  %471 = vadd.xlane.f32.xlu0 %v467_v23  ;;  %s2123_s18 = smov (!%p556_p11, %s648_s18), 0.0  ;;  %s843_s12 = sadd.s32 %s751_s11, %s1752_s23 }
  0x6a   : >> { %s844_s13 = sld [smem:[#allocation7 + %s843_s12]]  ;;  %p752_p13 = scmp.lt.s32.totalorder %s751_s11, %s1754_s24 }
  0x6c   : >> { %s2125_s29 = smov (!%p654_p12, %s746_s29), 0.0 }
  0x6d   : >> { %477 = vadd.xlane.f32.xlu1 %v470_v24  ;;  %473 = vadd.xlane.f32.xlu0 %v468_v25  ;;  %v542_v24 = vld [vmem:[%s1888_s17] sm:$0x1]  ;;  %v552_v25 = vstv %s2121_s2  ;;  %s838_s14 = scalar_select %p752_p13, 1, 0 }
  0x6e   : >> { %s849_s2 = sadd.s32 4, %s1842_s16 }
  0x6f   : >> { %p850_p0 = scmp.lt.s32.totalorder %s849_s2, %s1754_s24 }
  0x70   : >> { %s2127_s13 = smov (!%p752_p13, %s844_s13), 0.0 }
  0x71   : >> { %s936_s1 = scalar_select %p850_p0, 1, 0 }
  0xf6   : >> { %v476_v27 = vpop.xlane.xlu1 %475  ;;  %v472_v28 = vpop.xlane.xlu0 %471 }
  0xf7   : >> { %v481_v29 = vadd.f32 %v476_v27, %v1795_v6  ;;  %v479_v30 = vadd.f32 %v472_v28, %v1785_v4  ;;  %v546_v27 = vstv %s545_s27  ;;  %s941_s27 = sadd.s32 %s849_s2, %s1752_s23 }
  0xf8   : >> { %vm1892_vm4 = vcmp.eq.s32.totalorder %v546_v27, 1  ;;  %s942_s0 = sld [smem:[#allocation7 + %s941_s27]] }
  0xf9   : >> { %v489_v31 = vmin.f32 %v481_v29, 0.0  ;;  %v487_v32 = vmin.f32 %v479_v30, 0.0  ;;  %vm483_vm0 = vcmp.gt.f32.partialorder %v479_v30, 0.0  ;;  %vm485_vm2 = vcmp.gt.f32.partialorder %v481_v29, 0.0 }
  0xfa   : >> { %v478_v33 = vpop.xlane.xlu1 %477  ;;  %v474_v34 = vpop.xlane.xlu0 %473 }
  0xfb   : >> { %v491_v35 = vmul.f32 1.442695, %v487_v32  ;;  %v482_v36 = vadd.f32 %v478_v33, %v1797_v7  ;;  %v480_v37 = vadd.f32 %v474_v34, %v1787_v5  ;;  %v495_v38 = vmul.f32 1.442695, %v489_v31 }
  0xfd   : >> { %v488_v39 = vmin.f32 %v480_v37, 0.0  ;;  %1537 = vpow2.f32 %v491_v35  ;;  %v490_v40 = vmin.f32 %v482_v36, 0.0  ;;  %vm484_vm1 = vcmp.gt.f32.partialorder %v480_v37, 0.0 }
  0xfe   : >> { %1539 = vpow2.f32 %v495_v38  ;;  %vm486_vm3 = vcmp.gt.f32.partialorder %v482_v36, 0.0  ;;  %s2129_s0 = smov (!%p850_p0, %s942_s0), 0.0 }
  0xff   : >> { %v493_v41 = vmul.f32 1.442695, %v488_v39  ;;  %v497_v42 = vmul.f32 1.442695, %v490_v40 }
 0x101   : >> { %1541 = vpow2.f32 %v493_v41 }
 0x102   : >> { %1543 = vpow2.f32 %v497_v42 }
 0x107   : >> { %v1538_v43 = vpop.eup %1537 }
 0x108   : >> { %v1438_v44 = vadd.f32 -1.0, %v1538_v43  ;;  %v1540_v45 = vpop.eup %1539 }
 0x109   : >> { %v1440_v50 = vadd.f32 -1.0, %v1540_v45 }
 0x10a   : >> { %v503_v46 = vsel %vm483_vm0, %v479_v30, %v1438_v44 }
 0x10b   : >> { %v1542_v47 = vpop.eup %1541  ;;  %509 = vperm.xlu0 %1535, %v503_v46   ;;  %v505_v52 = vsel %vm485_vm2, %v481_v29, %v1440_v50 }
 0x10c   : >> { %v1439_v48 = vadd.f32 -1.0, %v1542_v47  ;;  %v1544_v51 = vpop.eup %1543 }
 0x10d   : >> { %v1441_v53 = vadd.f32 -1.0, %v1544_v51 }
 0x10e   : >> { %v504_v49 = vsel %vm484_vm1, %v480_v37, %v1439_v48 }
 0x10f   : >> { %514 = vperm.xlu1 %1536, %v504_v49   ;;  %v506_v54 = vsel %vm486_vm3, %v482_v36, %v1441_v53 }
 0x113   : >> { %519 = vperm.xlu1 %1536, %v505_v52  }
 0x117   : >> { %524 = vperm.xlu1 %1536, %v506_v54  }
 0x18a   : >> { %v510_v56 = vpop.permute.xlu0 %509 }
 0x18b   : >> { %v527_v59 = vmul.f32 %v510_v56, %v1799_v8 }
 0x18e   : >> { %v515_v55 = vpop.permute.xlu1 %514 }
 0x18f   : >> { %v528_v57 = vmul.f32 %v515_v55, %v1801_v9 }
 0x191   : >> { %v531_v61 = vadd.f32 %v528_v57, %v527_v59 }
 0x192   : >> { %v520_v58 = vpop.permute.xlu1 %519 }
 0x193   : >> { %v529_v60 = vmul.f32 %v520_v58, %v1803_v10 }
 0x195   : >> { %v532_v63 = vadd.f32 %v531_v61, %v529_v60 }
 0x196   : >> { %v525_v62 = vpop.permute.xlu1 %524 }
 0x197   : >> { %v530_v13 = vmul.f32 %v525_v62, %v1805_v11 }
 0x199   : >> { %v533_v15 = vadd.f32 %v532_v63, %v530_v13 }
 0x19b   : >> { %v534_v17 = vrot.slane %v533_v15, 4 }
 0x19d   : >> { %v535_v18 = vadd.f32 %v534_v17, %v533_v15 }
 0x19f   : >> { %v536_v19 = vrot.slane %v535_v18, 2 }
 0x1a1   : >> { %v537_v21 = vadd.f32 %v536_v19, %v535_v18 }
 0x1a3   : >> { %v538_v22 = vrot.slane %v537_v21, 1 }
 0x1a5   : >> { %v539_v23 = vadd.f32 %v538_v22, %v537_v21 }
 0x1a7   : >> { %v540_v26 = vadd.f32 %v539_v23, %v1807_v12 }
 0x1a9   : >> { %v543_v28 = vsub.f32 %v540_v26, %v542_v24  ;;  %v553_v29 = vmul.f32 %v552_v25, %v540_v26 }
 0x1ab   : >> { %v1896_v31 = vmul.f32 %v543_v28, %v543_v28  ;;  %v1899_v32 = vadd.f32 %v1671_v14, %v553_v29 }
 0x1ad   : >> { %v548_v33 = vsel %vm1892_vm4, %v1896_v31, 0.0  ;;  %v561_v34 = vrot.slane %v1899_v32, %v1867_v20 }
 0x1af   : >> { %v564_v35 = vmul.f32 %v561_v34, %v1778_v1  ;;  %v563_v36 = vmul.f32 %v561_v34, %v1776_v0  ;;  %v565_v37 = vmul.f32 %v561_v34, %v1780_v2  ;;  %v566_v38 = vmul.f32 %v561_v34, %v1783_v3 }
 0x1b1   : >> { %569 = vadd.xlane.f32.xlu0 %v564_v35  ;;  %567 = vadd.xlane.f32.xlu1 %v563_v36 }
 0x1b5   : >> { %571 = vadd.xlane.f32.xlu1 %v565_v37 }
 0x1b9   : >> { %573 = vadd.xlane.f32.xlu1 %v566_v38 }
 0x23e   : >> { %v570_v14 = vpop.xlane.xlu0 %569  ;;  %v568_v39 = vpop.xlane.xlu1 %567 }
 0x23f   : >> { %v576_v40 = vadd.f32 %v570_v14, %v1787_v5  ;;  %v575_v41 = vadd.f32 %v568_v39, %v1785_v4  ;;  %v1447_v14 = vld [vmem:[%s1888_s17 + $0x1] sm:$0x1]  ;;  %v650_v39 = vstv %s2123_s18  ;;  %s947_s18 = sadd.s32 5, %s1842_s16 }
 0x240   : >> { %p948_p1 = scmp.lt.s32.totalorder %s947_s18, %s1754_s24 }
 0x241   : >> { %v584_v42 = vmin.f32 %v576_v40, 0.0  ;;  %v583_v43 = vmin.f32 %v575_v41, 0.0  ;;  %vm580_vm5 = vcmp.gt.f32.partialorder %v576_v40, 0.0  ;;  %vm579_vm6 = vcmp.gt.f32.partialorder %v575_v41, 0.0 }
 0x242   : >> { %v572_v44 = vpop.xlane.xlu1 %571  ;;  %s1034_s28 = scalar_select %p948_p1, 1, 0 }
 0x243   : >> { %v589_v45 = vmul.f32 1.442695, %v584_v42  ;;  %v587_v46 = vmul.f32 1.442695, %v583_v43  ;;  %v577_v47 = vadd.f32 %v572_v44, %v1795_v6 }
 0x245   : >> { %1545 = vpow2.f32 %v589_v45  ;;  %v585_v48 = vmin.f32 %v577_v47, 0.0  ;;  %vm581_vm7 = vcmp.gt.f32.partialorder %v577_v47, 0.0 }
 0x246   : >> { %1547 = vpow2.f32 %v587_v46  ;;  %v574_v49 = vpop.xlane.xlu1 %573  ;;  %v549_v46 = vadd.f32 %v1667_v16, %v548_v33 }
 0x247   : >> { %v591_v50 = vmul.f32 1.442695, %v585_v48  ;;  %v578_v51 = vadd.f32 %v574_v49, %v1797_v7 }
 0x249   : >> { %1549 = vpow2.f32 %v591_v50  ;;  %v586_v52 = vmin.f32 %v578_v51, 0.0  ;;  %vm582_vm8 = vcmp.gt.f32.partialorder %v578_v51, 0.0 }
 0x24b   : >> { %v593_v53 = vmul.f32 1.442695, %v586_v52 }
 0x24d   : >> { %1551 = vpow2.f32 %v593_v53 }
 0x24f   : >> { %v1546_v54 = vpop.eup %1545 }
 0x250   : >> { %v1548_v55 = vpop.eup %1547  ;;  %v1443_v56 = vadd.f32 -1.0, %v1546_v54 }
 0x251   : >> { %v1442_v57 = vadd.f32 -1.0, %v1548_v55 }
 0x252   : >> { %v600_v58 = vsel %vm580_vm5, %v576_v40, %v1443_v56  ;;  %v643_v40 = vstv %s642_s19  ;;  %s1039_s19 = sadd.s32 %s947_s18, %s1752_s23 }
 0x253   : >> { %v1550_v59 = vpop.eup %1549  ;;  %610 = vperm.xlu0 %1535, %v600_v58   ;;  %v599_v60 = vsel %vm579_vm6, %v575_v41, %v1442_v57  ;;  %vm644_vm9 = vcmp.eq.s32.totalorder %v643_v40, 1  ;;  %s1040_s20 = sld [smem:[#allocation7 + %s1039_s19]] }
 0x254   : >> { %605 = vperm.xlu1 %1536, %v599_v60   ;;  %v1444_v61 = vadd.f32 -1.0, %v1550_v59 }
 0x256   : >> { %v601_v62 = vsel %vm581_vm7, %v577_v47, %v1444_v61 }
 0x257   : >> { %v1552_v63 = vpop.eup %1551 }
 0x258   : >> { %615 = vperm.xlu1 %1536, %v601_v62   ;;  %v1445_v13 = vadd.f32 -1.0, %v1552_v63 }
 0x259   : >> { %s2131_s20 = smov (!%p948_p1, %s1040_s20), 0.0 }
 0x25a   : >> { %v602_v15 = vsel %vm582_vm8, %v578_v51, %v1445_v13 }
 0x25c   : >> { %620 = vperm.xlu1 %1536, %v602_v15  }
 0x2d2   : >> { %v611_v17 = vpop.permute.xlu0 %610 }
 0x2d3   : >> { %v606_v18 = vpop.permute.xlu1 %605  ;;  %v624_v19 = vmul.f32 %v611_v17, %v1801_v9 }
 0x2d4   : >> { %v623_v21 = vmul.f32 %v606_v18, %v1799_v8 }
 0x2d6   : >> { %v627_v24 = vadd.f32 %v624_v19, %v623_v21 }
 0x2d7   : >> { %v616_v22 = vpop.permute.xlu1 %615 }
 0x2d8   : >> { %v625_v23 = vmul.f32 %v616_v22, %v1803_v10 }
 0x2da   : >> { %v628_v26 = vadd.f32 %v627_v24, %v625_v23 }
 0x2db   : >> { %v621_v25 = vpop.permute.xlu1 %620 }
 0x2dc   : >> { %v626_v27 = vmul.f32 %v621_v25, %v1805_v11 }
 0x2de   : >> { %v629_v28 = vadd.f32 %v628_v26, %v626_v27 }
 0x2e0   : >> { %v630_v29 = vrot.slane %v629_v28, 4 }
 0x2e2   : >> { %v631_v34 = vadd.f32 %v630_v29, %v629_v28 }
 0x2e4   : >> { %v632_v35 = vrot.slane %v631_v34, 2 }
 0x2e6   : >> { %v633_v36 = vadd.f32 %v632_v35, %v631_v34 }
 0x2e8   : >> { %v634_v37 = vrot.slane %v633_v36, 1 }
 0x2ea   : >> { %v635_v38 = vadd.f32 %v634_v37, %v633_v36 }
 0x2ec   : >> { %v636_v41 = vadd.f32 %v635_v38, %v1807_v12 }
 0x2ee   : >> { %v640_v42 = vsub.f32 %v636_v41, %v1447_v14  ;;  %v651_v43 = vmul.f32 %v650_v39, %v636_v41 }
 0x2f0   : >> { %v641_v44 = vmul.f32 %v640_v42, %v640_v42  ;;  %v1924_v45 = vadd.f32 %v651_v43, %v1899_v32 }
 0x2f2   : >> { %v645_v47 = vsel %vm644_vm9, %v641_v44, 0.0  ;;  %v659_v48 = vrot.slane %v1924_v45, %v1867_v20 }
 0x2f3   : >> { %v1933_v49 = vadd.f32 %v645_v47, %v549_v46 }
 0x2f4   : >> { %v662_v50 = vmul.f32 %v659_v48, %v1778_v1  ;;  %v661_v51 = vmul.f32 %v659_v48, %v1776_v0  ;;  %v663_v32 = vmul.f32 %v659_v48, %v1780_v2  ;;  %v664_v30 = vmul.f32 %v659_v48, %v1783_v3 }
 0x2f6   : >> { %667 = vadd.xlane.f32.xlu0 %v662_v50  ;;  %665 = vadd.xlane.f32.xlu1 %v661_v51  ;;  %v1453_v51 = vld [vmem:[%s1888_s17 + $0x2] sm:$0x1] }
 0x2fa   : >> { %669 = vadd.xlane.f32.xlu0 %v663_v32  ;;  %671 = vadd.xlane.f32.xlu1 %v664_v30  ;;  %v748_v32 = vstv %s2125_s29  ;;  %v741_v30 = vstv %s740_s10  ;;  %s1045_s29 = sadd.s32 6, %s1842_s16 }
 0x2fb   : >> { %vm742_vm14 = vcmp.eq.s32.totalorder %v741_v30, 1  ;;  %s1137_s10 = sadd.s32 %s1045_s29, %s1752_s23  ;;  %p1046_p2 = scmp.lt.s32.totalorder %s1045_s29, %s1754_s24 }
 0x2fc   : >> { %s1138_s11 = sld [smem:[#allocation7 + %s1137_s10]] }
 0x2fd   : >> { %s1132_s12 = scalar_select %p1046_p2, 1, 0 }
 0x302   : >> { %s2133_s11 = smov (!%p1046_p2, %s1138_s11), 0.0 }
 0x383   : >> { %v668_v31 = vpop.xlane.xlu0 %667  ;;  %v666_v16 = vpop.xlane.xlu1 %665 }
 0x384   : >> { %v674_v33 = vadd.f32 %v668_v31, %v1787_v5  ;;  %v673_v52 = vadd.f32 %v666_v16, %v1785_v4 }
 0x386   : >> { %v682_v53 = vmin.f32 %v674_v33, 0.0  ;;  %v681_v54 = vmin.f32 %v673_v52, 0.0  ;;  %vm678_vm10 = vcmp.gt.f32.partialorder %v674_v33, 0.0  ;;  %vm677_vm11 = vcmp.gt.f32.partialorder %v673_v52, 0.0 }
 0x387   : >> { %v670_v55 = vpop.xlane.xlu0 %669  ;;  %v672_v56 = vpop.xlane.xlu1 %671 }
 0x388   : >> { %v687_v57 = vmul.f32 1.442695, %v682_v53  ;;  %v685_v58 = vmul.f32 1.442695, %v681_v54  ;;  %v675_v59 = vadd.f32 %v670_v55, %v1795_v6  ;;  %v676_v60 = vadd.f32 %v672_v56, %v1797_v7 }
 0x38a   : >> { %1553 = vpow2.f32 %v687_v57  ;;  %v683_v61 = vmin.f32 %v675_v59, 0.0  ;;  %v684_v62 = vmin.f32 %v676_v60, 0.0  ;;  %vm679_vm12 = vcmp.gt.f32.partialorder %v675_v59, 0.0 }
 0x38b   : >> { %1555 = vpow2.f32 %v685_v58  ;;  %vm680_vm13 = vcmp.gt.f32.partialorder %v676_v60, 0.0 }
 0x38c   : >> { %v689_v63 = vmul.f32 1.442695, %v683_v61  ;;  %v691_v13 = vmul.f32 1.442695, %v684_v62 }
 0x38e   : >> { %1557 = vpow2.f32 %v689_v63 }
 0x38f   : >> { %1559 = vpow2.f32 %v691_v13 }
 0x394   : >> { %v1554_v15 = vpop.eup %1553 }
 0x395   : >> { %v1556_v17 = vpop.eup %1555  ;;  %v1449_v18 = vadd.f32 -1.0, %v1554_v15 }
 0x396   : >> { %v1448_v19 = vadd.f32 -1.0, %v1556_v17 }
 0x397   : >> { %v698_v21 = vsel %vm678_vm10, %v674_v33, %v1449_v18 }
 0x398   : >> { %v1558_v22 = vpop.eup %1557  ;;  %708 = vperm.xlu1 %1536, %v698_v21   ;;  %v697_v23 = vsel %vm677_vm11, %v673_v52, %v1448_v19 }
 0x399   : >> { %v1560_v24 = vpop.eup %1559  ;;  %703 = vperm.xlu0 %1535, %v697_v23   ;;  %v1450_v25 = vadd.f32 -1.0, %v1558_v22 }
 0x39a   : >> { %v1451_v26 = vadd.f32 -1.0, %v1560_v24 }
 0x39b   : >> { %v699_v27 = vsel %vm679_vm12, %v675_v59, %v1450_v25 }
 0x39c   : >> { %713 = vperm.xlu1 %1536, %v699_v27   ;;  %v700_v28 = vsel %vm680_vm13, %v676_v60, %v1451_v26 }
 0x39d   : >> { %718 = vperm.xlu0 %1535, %v700_v28  }
 0x417   : >> { %v709_v29 = vpop.permute.xlu1 %708 }
 0x418   : >> { %v704_v34 = vpop.permute.xlu0 %703  ;;  %v722_v35 = vmul.f32 %v709_v29, %v1801_v9 }
 0x419   : >> { %v721_v36 = vmul.f32 %v704_v34, %v1799_v8 }
 0x41b   : >> { %v714_v37 = vpop.permute.xlu1 %713  ;;  %v725_v38 = vadd.f32 %v722_v35, %v721_v36 }
 0x41c   : >> { %v719_v14 = vpop.permute.xlu0 %718  ;;  %v723_v39 = vmul.f32 %v714_v37, %v1803_v10 }
 0x41d   : >> { %v724_v40 = vmul.f32 %v719_v14, %v1805_v11 }
 0x41e   : >> { %v726_v41 = vadd.f32 %v725_v38, %v723_v39 }
 0x420   : >> { %v727_v42 = vadd.f32 %v726_v41, %v724_v40 }
 0x422   : >> { %v728_v43 = vrot.slane %v727_v42, 4 }
 0x424   : >> { %v729_v44 = vadd.f32 %v728_v43, %v727_v42 }
 0x426   : >> { %v730_v46 = vrot.slane %v729_v44, 2 }
 0x428   : >> { %v731_v47 = vadd.f32 %v730_v46, %v729_v44 }
 0x42a   : >> { %v732_v48 = vrot.slane %v731_v47, 1 }
 0x42c   : >> { %v733_v50 = vadd.f32 %v732_v48, %v731_v47 }
 0x42e   : >> { %v734_v31 = vadd.f32 %v733_v50, %v1807_v12 }
 0x430   : >> { %v738_v16 = vsub.f32 %v734_v31, %v1453_v51  ;;  %v749_v33 = vmul.f32 %v748_v32, %v734_v31 }
 0x432   : >> { %v739_v52 = vmul.f32 %v738_v16, %v738_v16  ;;  %v1953_v53 = vadd.f32 %v749_v33, %v1924_v45 }
 0x434   : >> { %v743_v54 = vsel %vm742_vm14, %v739_v52, 0.0  ;;  %v757_v55 = vrot.slane %v1953_v53, %v1867_v20 }
 0x435   : >> { %v1958_v56 = vadd.f32 %v743_v54, %v1933_v49 }
 0x436   : >> { %v760_v57 = vmul.f32 %v757_v55, %v1778_v1  ;;  %v759_v58 = vmul.f32 %v757_v55, %v1776_v0  ;;  %v761_v59 = vmul.f32 %v757_v55, %v1780_v2  ;;  %v762_v60 = vmul.f32 %v757_v55, %v1783_v3 }
 0x438   : >> { %765 = vadd.xlane.f32.xlu0 %v760_v57  ;;  %763 = vadd.xlane.f32.xlu1 %v759_v58  ;;  %v1459_v58 = vld [vmem:[%s1888_s17 + $0x3] sm:$0x1] }
 0x43c   : >> { %767 = vadd.xlane.f32.xlu0 %v761_v59  ;;  %769 = vadd.xlane.f32.xlu1 %v762_v60  ;;  %v846_v59 = vstv %s2127_s13  ;;  %v839_v60 = vstv %s838_s14  ;;  %s1143_s13 = sadd.s32 7, %s1842_s16 }
 0x43d   : >> { %vm840_vm3 = vcmp.eq.s32.totalorder %v839_v60, 1  ;;  %s1235_s14 = sadd.s32 %s1143_s13, %s1752_s23  ;;  %p1144_p3 = scmp.lt.s32.totalorder %s1143_s13, %s1754_s24 }
 0x43e   : >> { %s1236_s2 = sld [smem:[#allocation7 + %s1235_s14]] }
 0x43f   : >> { %s1230_s27 = scalar_select %p1144_p3, 1, 0 }
 0x444   : >> { %s2135_s2 = smov (!%p1144_p3, %s1236_s2), 0.0 }
 0x4c5   : >> { %v766_v45 = vpop.xlane.xlu0 %765  ;;  %v764_v61 = vpop.xlane.xlu1 %763 }
 0x4c6   : >> { %v772_v62 = vadd.f32 %v766_v45, %v1787_v5  ;;  %v771_v63 = vadd.f32 %v764_v61, %v1785_v4 }
 0x4c8   : >> { %v780_v49 = vmin.f32 %v772_v62, 0.0  ;;  %v779_v13 = vmin.f32 %v771_v63, 0.0  ;;  %vm776_vm15 = vcmp.gt.f32.partialorder %v772_v62, 0.0  ;;  %vm775_vm0 = vcmp.gt.f32.partialorder %v771_v63, 0.0 }
 0x4c9   : >> { %v768_v15 = vpop.xlane.xlu0 %767  ;;  %v770_v17 = vpop.xlane.xlu1 %769 }
 0x4ca   : >> { %v785_v18 = vmul.f32 1.442695, %v780_v49  ;;  %v783_v19 = vmul.f32 1.442695, %v779_v13  ;;  %v773_v21 = vadd.f32 %v768_v15, %v1795_v6  ;;  %v774_v22 = vadd.f32 %v770_v17, %v1797_v7 }
 0x4cc   : >> { %1561 = vpow2.f32 %v785_v18  ;;  %v781_v23 = vmin.f32 %v773_v21, 0.0  ;;  %v782_v24 = vmin.f32 %v774_v22, 0.0  ;;  %vm777_vm1 = vcmp.gt.f32.partialorder %v773_v21, 0.0 }
 0x4cd   : >> { %1563 = vpow2.f32 %v783_v19  ;;  %vm778_vm2 = vcmp.gt.f32.partialorder %v774_v22, 0.0 }
 0x4ce   : >> { %v787_v25 = vmul.f32 1.442695, %v781_v23  ;;  %v789_v26 = vmul.f32 1.442695, %v782_v24 }
 0x4d0   : >> { %1565 = vpow2.f32 %v787_v25 }
 0x4d1   : >> { %1567 = vpow2.f32 %v789_v26 }
 0x4d6   : >> { %v1562_v27 = vpop.eup %1561 }
 0x4d7   : >> { %v1564_v28 = vpop.eup %1563  ;;  %v1455_v29 = vadd.f32 -1.0, %v1562_v27 }
 0x4d8   : >> { %v1454_v34 = vadd.f32 -1.0, %v1564_v28 }
 0x4d9   : >> { %v796_v35 = vsel %vm776_vm15, %v772_v62, %v1455_v29 }
 0x4da   : >> { %v1566_v36 = vpop.eup %1565  ;;  %806 = vperm.xlu1 %1536, %v796_v35   ;;  %v795_v37 = vsel %vm775_vm0, %v771_v63, %v1454_v34 }
 0x4db   : >> { %v1568_v38 = vpop.eup %1567  ;;  %801 = vperm.xlu0 %1535, %v795_v37   ;;  %v1456_v14 = vadd.f32 -1.0, %v1566_v36 }
 0x4dc   : >> { %v1457_v39 = vadd.f32 -1.0, %v1568_v38 }
 0x4dd   : >> { %v797_v40 = vsel %vm777_vm1, %v773_v21, %v1456_v14 }
 0x4de   : >> { %811 = vperm.xlu1 %1536, %v797_v40   ;;  %v798_v41 = vsel %vm778_vm2, %v774_v22, %v1457_v39 }
 0x4df   : >> { %816 = vperm.xlu0 %1535, %v798_v41  }
 0x559   : >> { %v807_v42 = vpop.permute.xlu1 %806 }
 0x55a   : >> { %v802_v43 = vpop.permute.xlu0 %801  ;;  %v820_v44 = vmul.f32 %v807_v42, %v1801_v9 }
 0x55b   : >> { %v819_v46 = vmul.f32 %v802_v43, %v1799_v8 }
 0x55d   : >> { %v812_v47 = vpop.permute.xlu1 %811  ;;  %v823_v48 = vadd.f32 %v820_v44, %v819_v46 }
 0x55e   : >> { %v817_v50 = vpop.permute.xlu0 %816  ;;  %v821_v51 = vmul.f32 %v812_v47, %v1803_v10 }
 0x55f   : >> { %v822_v32 = vmul.f32 %v817_v50, %v1805_v11 }
 0x560   : >> { %v824_v30 = vadd.f32 %v823_v48, %v821_v51 }
 0x562   : >> { %v825_v31 = vadd.f32 %v824_v30, %v822_v32 }
 0x564   : >> { %v826_v16 = vrot.slane %v825_v31, 4 }
 0x566   : >> { %v827_v33 = vadd.f32 %v826_v16, %v825_v31 }
 0x568   : >> { %v828_v52 = vrot.slane %v827_v33, 2 }
 0x56a   : >> { %v829_v54 = vadd.f32 %v828_v52, %v827_v33 }
 0x56c   : >> { %v830_v55 = vrot.slane %v829_v54, 1 }
 0x56e   : >> { %v831_v57 = vadd.f32 %v830_v55, %v829_v54 }
 0x570   : >> { %v832_v45 = vadd.f32 %v831_v57, %v1807_v12 }
 0x572   : >> { %v836_v61 = vsub.f32 %v832_v45, %v1459_v58  ;;  %v847_v62 = vmul.f32 %v846_v59, %v832_v45 }
 0x574   : >> { %v837_v63 = vmul.f32 %v836_v61, %v836_v61  ;;  %v1978_v49 = vadd.f32 %v847_v62, %v1953_v53 }
 0x576   : >> { %v841_v13 = vsel %vm840_vm3, %v837_v63, 0.0  ;;  %v855_v15 = vrot.slane %v1978_v49, %v1867_v20 }
 0x577   : >> { %v1983_v17 = vadd.f32 %v841_v13, %v1958_v56 }
 0x578   : >> { %v858_v18 = vmul.f32 %v855_v15, %v1778_v1  ;;  %v857_v19 = vmul.f32 %v855_v15, %v1776_v0  ;;  %v859_v21 = vmul.f32 %v855_v15, %v1780_v2  ;;  %v860_v22 = vmul.f32 %v855_v15, %v1783_v3 }
 0x57a   : >> { %863 = vadd.xlane.f32.xlu0 %v858_v18  ;;  %861 = vadd.xlane.f32.xlu1 %v857_v19  ;;  %v1465_v19 = vld [vmem:[%s1888_s17 + $0x4] sm:$0x1] }
 0x57e   : >> { %865 = vadd.xlane.f32.xlu0 %v859_v21  ;;  %867 = vadd.xlane.f32.xlu1 %v860_v22  ;;  %v944_v21 = vstv %s2129_s0  ;;  %v937_v22 = vstv %s936_s1 }
 0x57f   : >> { %vm938_vm8 = vcmp.eq.s32.totalorder %v937_v22, 1 }
 0x607   : >> { %v864_v53 = vpop.xlane.xlu0 %863  ;;  %v862_v23 = vpop.xlane.xlu1 %861 }
 0x608   : >> { %v870_v24 = vadd.f32 %v864_v53, %v1787_v5  ;;  %v869_v25 = vadd.f32 %v862_v23, %v1785_v4 }
 0x60a   : >> { %v878_v56 = vmin.f32 %v870_v24, 0.0  ;;  %v877_v26 = vmin.f32 %v869_v25, 0.0  ;;  %vm874_vm4 = vcmp.gt.f32.partialorder %v870_v24, 0.0  ;;  %vm873_vm5 = vcmp.gt.f32.partialorder %v869_v25, 0.0 }
 0x60b   : >> { %v866_v27 = vpop.xlane.xlu0 %865  ;;  %v868_v28 = vpop.xlane.xlu1 %867 }
 0x60c   : >> { %v883_v29 = vmul.f32 1.442695, %v878_v56  ;;  %v881_v34 = vmul.f32 1.442695, %v877_v26  ;;  %v871_v35 = vadd.f32 %v866_v27, %v1795_v6  ;;  %v872_v36 = vadd.f32 %v868_v28, %v1797_v7 }
 0x60e   : >> { %1569 = vpow2.f32 %v883_v29  ;;  %v879_v37 = vmin.f32 %v871_v35, 0.0  ;;  %v880_v38 = vmin.f32 %v872_v36, 0.0  ;;  %vm875_vm6 = vcmp.gt.f32.partialorder %v871_v35, 0.0 }
 0x60f   : >> { %1571 = vpow2.f32 %v881_v34  ;;  %vm876_vm7 = vcmp.gt.f32.partialorder %v872_v36, 0.0 }
 0x610   : >> { %v885_v14 = vmul.f32 1.442695, %v879_v37  ;;  %v887_v39 = vmul.f32 1.442695, %v880_v38 }
 0x612   : >> { %1573 = vpow2.f32 %v885_v14 }
 0x613   : >> { %1575 = vpow2.f32 %v887_v39 }
 0x618   : >> { %v1570_v40 = vpop.eup %1569 }
 0x619   : >> { %v1572_v41 = vpop.eup %1571  ;;  %v1461_v42 = vadd.f32 -1.0, %v1570_v40 }
 0x61a   : >> { %v1460_v43 = vadd.f32 -1.0, %v1572_v41 }
 0x61b   : >> { %v894_v44 = vsel %vm874_vm4, %v870_v24, %v1461_v42 }
 0x61c   : >> { %v1574_v46 = vpop.eup %1573  ;;  %904 = vperm.xlu1 %1536, %v894_v44   ;;  %v893_v47 = vsel %vm873_vm5, %v869_v25, %v1460_v43 }
 0x61d   : >> { %v1576_v48 = vpop.eup %1575  ;;  %899 = vperm.xlu0 %1535, %v893_v47   ;;  %v1462_v50 = vadd.f32 -1.0, %v1574_v46 }
 0x61e   : >> { %v1463_v51 = vadd.f32 -1.0, %v1576_v48 }
 0x61f   : >> { %v895_v32 = vsel %vm875_vm6, %v871_v35, %v1462_v50 }
 0x620   : >> { %909 = vperm.xlu1 %1536, %v895_v32   ;;  %v896_v30 = vsel %vm876_vm7, %v872_v36, %v1463_v51 }
 0x621   : >> { %914 = vperm.xlu0 %1535, %v896_v30  }
 0x69b   : >> { %v905_v31 = vpop.permute.xlu1 %904 }
 0x69c   : >> { %v900_v16 = vpop.permute.xlu0 %899  ;;  %v918_v33 = vmul.f32 %v905_v31, %v1801_v9 }
 0x69d   : >> { %v917_v52 = vmul.f32 %v900_v16, %v1799_v8 }
 0x69f   : >> { %v910_v54 = vpop.permute.xlu1 %909  ;;  %v921_v55 = vadd.f32 %v918_v33, %v917_v52 }
 0x6a0   : >> { %v915_v57 = vpop.permute.xlu0 %914  ;;  %v919_v58 = vmul.f32 %v910_v54, %v1803_v10 }
 0x6a1   : >> { %v920_v59 = vmul.f32 %v915_v57, %v1805_v11 }
 0x6a2   : >> { %v922_v60 = vadd.f32 %v921_v55, %v919_v58 }
 0x6a4   : >> { %v923_v45 = vadd.f32 %v922_v60, %v920_v59 }
 0x6a6   : >> { %v924_v61 = vrot.slane %v923_v45, 4 }
 0x6a8   : >> { %v925_v62 = vadd.f32 %v924_v61, %v923_v45 }
 0x6aa   : >> { %v926_v63 = vrot.slane %v925_v62, 2 }
 0x6ac   : >> { %v927_v13 = vadd.f32 %v926_v63, %v925_v62 }
 0x6ae   : >> { %v928_v15 = vrot.slane %v927_v13, 1 }
 0x6b0   : >> { %v929_v18 = vadd.f32 %v928_v15, %v927_v13 }
 0x6b2   : >> { %v930_v53 = vadd.f32 %v929_v18, %v1807_v12 }
 0x6b4   : >> { %v934_v23 = vsub.f32 %v930_v53, %v1465_v19  ;;  %v945_v24 = vmul.f32 %v944_v21, %v930_v53 }
 0x6b6   : >> { %v935_v25 = vmul.f32 %v934_v23, %v934_v23  ;;  %v2003_v56 = vadd.f32 %v945_v24, %v1978_v49 }
 0x6b8   : >> { %v939_v26 = vsel %vm938_vm8, %v935_v25, 0.0  ;;  %v953_v27 = vrot.slane %v2003_v56, %v1867_v20 }
 0x6b9   : >> { %v2008_v28 = vadd.f32 %v939_v26, %v1983_v17 }
 0x6ba   : >> { %v956_v29 = vmul.f32 %v953_v27, %v1778_v1  ;;  %v955_v34 = vmul.f32 %v953_v27, %v1776_v0  ;;  %v957_v35 = vmul.f32 %v953_v27, %v1780_v2  ;;  %v958_v36 = vmul.f32 %v953_v27, %v1783_v3 }
 0x6bc   : >> { %961 = vadd.xlane.f32.xlu0 %v956_v29  ;;  %959 = vadd.xlane.f32.xlu1 %v955_v34  ;;  %v1471_v34 = vld [vmem:[%s1888_s17 + $0x5] sm:$0x1] }
 0x6c0   : >> { %963 = vadd.xlane.f32.xlu0 %v957_v35  ;;  %965 = vadd.xlane.f32.xlu1 %v958_v36  ;;  %v1042_v35 = vstv %s2131_s20  ;;  %v1035_v36 = vstv %s1034_s28 }
 0x6c1   : >> { %vm1036_vm13 = vcmp.eq.s32.totalorder %v1035_v36, 1 }
 0x749   : >> { %v962_v49 = vpop.xlane.xlu0 %961  ;;  %v960_v37 = vpop.xlane.xlu1 %959 }
 0x74a   : >> { %v968_v38 = vadd.f32 %v962_v49, %v1787_v5  ;;  %v967_v14 = vadd.f32 %v960_v37, %v1785_v4 }
 0x74c   : >> { %v976_v17 = vmin.f32 %v968_v38, 0.0  ;;  %v975_v39 = vmin.f32 %v967_v14, 0.0  ;;  %vm972_vm9 = vcmp.gt.f32.partialorder %v968_v38, 0.0  ;;  %vm971_vm10 = vcmp.gt.f32.partialorder %v967_v14, 0.0 }
 0x74d   : >> { %v964_v40 = vpop.xlane.xlu0 %963  ;;  %v966_v41 = vpop.xlane.xlu1 %965 }
 0x74e   : >> { %v981_v42 = vmul.f32 1.442695, %v976_v17  ;;  %v979_v43 = vmul.f32 1.442695, %v975_v39  ;;  %v969_v44 = vadd.f32 %v964_v40, %v1795_v6  ;;  %v970_v46 = vadd.f32 %v966_v41, %v1797_v7 }
 0x750   : >> { %1577 = vpow2.f32 %v981_v42  ;;  %v977_v47 = vmin.f32 %v969_v44, 0.0  ;;  %v978_v48 = vmin.f32 %v970_v46, 0.0  ;;  %vm973_vm11 = vcmp.gt.f32.partialorder %v969_v44, 0.0 }
 0x751   : >> { %1579 = vpow2.f32 %v979_v43  ;;  %vm974_vm12 = vcmp.gt.f32.partialorder %v970_v46, 0.0 }
 0x752   : >> { %v983_v50 = vmul.f32 1.442695, %v977_v47  ;;  %v985_v51 = vmul.f32 1.442695, %v978_v48 }
 0x754   : >> { %1581 = vpow2.f32 %v983_v50 }
 0x755   : >> { %1583 = vpow2.f32 %v985_v51 }
 0x75a   : >> { %v1578_v32 = vpop.eup %1577 }
 0x75b   : >> { %v1580_v30 = vpop.eup %1579  ;;  %v1467_v31 = vadd.f32 -1.0, %v1578_v32 }
 0x75c   : >> { %v1466_v16 = vadd.f32 -1.0, %v1580_v30 }
 0x75d   : >> { %v992_v33 = vsel %vm972_vm9, %v968_v38, %v1467_v31 }
 0x75e   : >> { %v1582_v52 = vpop.eup %1581  ;;  %1002 = vperm.xlu1 %1536, %v992_v33   ;;  %v991_v54 = vsel %vm971_vm10, %v967_v14, %v1466_v16 }
 0x75f   : >> { %v1584_v55 = vpop.eup %1583  ;;  %997 = vperm.xlu0 %1535, %v991_v54   ;;  %v1468_v57 = vadd.f32 -1.0, %v1582_v52 }
 0x760   : >> { %v1469_v58 = vadd.f32 -1.0, %v1584_v55 }
 0x761   : >> { %v993_v59 = vsel %vm973_vm11, %v969_v44, %v1468_v57 }
 0x762   : >> { %1007 = vperm.xlu1 %1536, %v993_v59   ;;  %v994_v60 = vsel %vm974_vm12, %v970_v46, %v1469_v58 }
 0x763   : >> { %1012 = vperm.xlu0 %1535, %v994_v60  }
 0x7dd   : >> { %v1003_v45 = vpop.permute.xlu1 %1002 }
 0x7de   : >> { %v998_v61 = vpop.permute.xlu0 %997  ;;  %v1016_v62 = vmul.f32 %v1003_v45, %v1801_v9 }
 0x7df   : >> { %v1015_v63 = vmul.f32 %v998_v61, %v1799_v8 }
 0x7e1   : >> { %v1008_v13 = vpop.permute.xlu1 %1007  ;;  %v1019_v15 = vadd.f32 %v1016_v62, %v1015_v63 }
 0x7e2   : >> { %v1013_v18 = vpop.permute.xlu0 %1012  ;;  %v1017_v19 = vmul.f32 %v1008_v13, %v1803_v10 }
 0x7e3   : >> { %v1018_v21 = vmul.f32 %v1013_v18, %v1805_v11 }
 0x7e4   : >> { %v1020_v22 = vadd.f32 %v1019_v15, %v1017_v19 }
 0x7e6   : >> { %v1021_v53 = vadd.f32 %v1020_v22, %v1018_v21 }
 0x7e8   : >> { %v1022_v23 = vrot.slane %v1021_v53, 4 }
 0x7ea   : >> { %v1023_v24 = vadd.f32 %v1022_v23, %v1021_v53 }
 0x7ec   : >> { %v1024_v25 = vrot.slane %v1023_v24, 2 }
 0x7ee   : >> { %v1025_v26 = vadd.f32 %v1024_v25, %v1023_v24 }
 0x7f0   : >> { %v1026_v27 = vrot.slane %v1025_v26, 1 }
 0x7f2   : >> { %v1027_v29 = vadd.f32 %v1026_v27, %v1025_v26 }
 0x7f4   : >> { %v1028_v49 = vadd.f32 %v1027_v29, %v1807_v12 }
 0x7f6   : >> { %v1032_v37 = vsub.f32 %v1028_v49, %v1471_v34  ;;  %v1043_v38 = vmul.f32 %v1042_v35, %v1028_v49 }
 0x7f8   : >> { %v1033_v14 = vmul.f32 %v1032_v37, %v1032_v37  ;;  %v2028_v17 = vadd.f32 %v1043_v38, %v2003_v56 }
 0x7fa   : >> { %v1037_v39 = vsel %vm1036_vm13, %v1033_v14, 0.0  ;;  %v1051_v40 = vrot.slane %v2028_v17, %v1867_v20 }
 0x7fb   : >> { %v2033_v41 = vadd.f32 %v1037_v39, %v2008_v28 }
 0x7fc   : >> { %v1054_v42 = vmul.f32 %v1051_v40, %v1778_v1  ;;  %v1053_v43 = vmul.f32 %v1051_v40, %v1776_v0  ;;  %v1055_v44 = vmul.f32 %v1051_v40, %v1780_v2  ;;  %v1056_v46 = vmul.f32 %v1051_v40, %v1783_v3 }
 0x7fe   : >> { %1059 = vadd.xlane.f32.xlu0 %v1054_v42  ;;  %1057 = vadd.xlane.f32.xlu1 %v1053_v43  ;;  %v1477_v43 = vld [vmem:[%s1888_s17 + $0x6] sm:$0x1] }
 0x802   : >> { %1061 = vadd.xlane.f32.xlu0 %v1055_v44  ;;  %1063 = vadd.xlane.f32.xlu1 %v1056_v46  ;;  %v1140_v44 = vstv %s2133_s11  ;;  %v1133_v46 = vstv %s1132_s12 }
 0x803   : >> { %vm1134_vm2 = vcmp.eq.s32.totalorder %v1133_v46, 1 }
 0x88b   : >> { %v1060_v56 = vpop.xlane.xlu0 %1059  ;;  %v1058_v47 = vpop.xlane.xlu1 %1057 }
 0x88c   : >> { %v1066_v48 = vadd.f32 %v1060_v56, %v1787_v5  ;;  %v1065_v50 = vadd.f32 %v1058_v47, %v1785_v4 }
 0x88e   : >> { %v1074_v28 = vmin.f32 %v1066_v48, 0.0  ;;  %v1073_v51 = vmin.f32 %v1065_v50, 0.0  ;;  %vm1070_vm14 = vcmp.gt.f32.partialorder %v1066_v48, 0.0  ;;  %vm1069_vm15 = vcmp.gt.f32.partialorder %v1065_v50, 0.0 }
 0x88f   : >> { %v1062_v32 = vpop.xlane.xlu0 %1061  ;;  %v1064_v30 = vpop.xlane.xlu1 %1063 }
 0x890   : >> { %v1079_v31 = vmul.f32 1.442695, %v1074_v28  ;;  %v1077_v16 = vmul.f32 1.442695, %v1073_v51  ;;  %v1067_v33 = vadd.f32 %v1062_v32, %v1795_v6  ;;  %v1068_v52 = vadd.f32 %v1064_v30, %v1797_v7 }
 0x892   : >> { %1585 = vpow2.f32 %v1079_v31  ;;  %v1075_v54 = vmin.f32 %v1067_v33, 0.0  ;;  %v1076_v55 = vmin.f32 %v1068_v52, 0.0  ;;  %vm1071_vm0 = vcmp.gt.f32.partialorder %v1067_v33, 0.0 }
 0x893   : >> { %1587 = vpow2.f32 %v1077_v16  ;;  %vm1072_vm1 = vcmp.gt.f32.partialorder %v1068_v52, 0.0 }
 0x894   : >> { %v1081_v57 = vmul.f32 1.442695, %v1075_v54  ;;  %v1083_v58 = vmul.f32 1.442695, %v1076_v55 }
 0x896   : >> { %1589 = vpow2.f32 %v1081_v57 }
 0x897   : >> { %1591 = vpow2.f32 %v1083_v58 }
 0x89c   : >> { %v1586_v59 = vpop.eup %1585 }
 0x89d   : >> { %v1588_v60 = vpop.eup %1587  ;;  %v1473_v45 = vadd.f32 -1.0, %v1586_v59 }
 0x89e   : >> { %v1472_v61 = vadd.f32 -1.0, %v1588_v60 }
 0x89f   : >> { %v1090_v62 = vsel %vm1070_vm14, %v1066_v48, %v1473_v45 }
 0x8a0   : >> { %v1590_v63 = vpop.eup %1589  ;;  %1100 = vperm.xlu1 %1536, %v1090_v62   ;;  %v1089_v13 = vsel %vm1069_vm15, %v1065_v50, %v1472_v61 }
 0x8a1   : >> { %v1592_v15 = vpop.eup %1591  ;;  %1095 = vperm.xlu0 %1535, %v1089_v13   ;;  %v1474_v18 = vadd.f32 -1.0, %v1590_v63 }
 0x8a2   : >> { %v1475_v19 = vadd.f32 -1.0, %v1592_v15 }
 0x8a3   : >> { %v1091_v21 = vsel %vm1071_vm0, %v1067_v33, %v1474_v18 }
 0x8a4   : >> { %1105 = vperm.xlu1 %1536, %v1091_v21   ;;  %v1092_v22 = vsel %vm1072_vm1, %v1068_v52, %v1475_v19 }
 0x8a5   : >> { %1110 = vperm.xlu0 %1535, %v1092_v22  }
 0x91f   : >> { %v1101_v53 = vpop.permute.xlu1 %1100 }
 0x920   : >> { %v1096_v23 = vpop.permute.xlu0 %1095  ;;  %v1114_v24 = vmul.f32 %v1101_v53, %v1801_v9 }
 0x921   : >> { %v1113_v25 = vmul.f32 %v1096_v23, %v1799_v8 }
 0x923   : >> { %v1106_v26 = vpop.permute.xlu1 %1105  ;;  %v1117_v27 = vadd.f32 %v1114_v24, %v1113_v25 }
 0x924   : >> { %v1111_v29 = vpop.permute.xlu0 %1110  ;;  %v1115_v34 = vmul.f32 %v1106_v26, %v1803_v10 }
 0x925   : >> { %v1116_v35 = vmul.f32 %v1111_v29, %v1805_v11 }
 0x926   : >> { %v1118_v36 = vadd.f32 %v1117_v27, %v1115_v34 }
 0x928   : >> { %v1119_v49 = vadd.f32 %v1118_v36, %v1116_v35 }
 0x92a   : >> { %v1120_v37 = vrot.slane %v1119_v49, 4 }
 0x92c   : >> { %v1121_v38 = vadd.f32 %v1120_v37, %v1119_v49 }
 0x92e   : >> { %v1122_v14 = vrot.slane %v1121_v38, 2 }
 0x930   : >> { %v1123_v39 = vadd.f32 %v1122_v14, %v1121_v38 }
 0x932   : >> { %v1124_v40 = vrot.slane %v1123_v39, 1 }
 0x934   : >> { %v1125_v42 = vadd.f32 %v1124_v40, %v1123_v39 }
 0x936   : >> { %v1126_v56 = vadd.f32 %v1125_v42, %v1807_v12 }
 0x938   : >> { %v1130_v47 = vsub.f32 %v1126_v56, %v1477_v43  ;;  %v1141_v48 = vmul.f32 %v1140_v44, %v1126_v56 }
 0x93a   : >> { %v1131_v50 = vmul.f32 %v1130_v47, %v1130_v47  ;;  %v2053_v28 = vadd.f32 %v1141_v48, %v2028_v17 }
 0x93c   : >> { %v1135_v51 = vsel %vm1134_vm2, %v1131_v50, 0.0  ;;  %v1149_v32 = vrot.slane %v2053_v28, %v1867_v20 }
 0x93d   : >> { %v2058_v30 = vadd.f32 %v1135_v51, %v2033_v41 }
 0x93e   : >> { %v1152_v31 = vmul.f32 %v1149_v32, %v1778_v1  ;;  %v1151_v16 = vmul.f32 %v1149_v32, %v1776_v0  ;;  %v1153_v33 = vmul.f32 %v1149_v32, %v1780_v2  ;;  %v1154_v52 = vmul.f32 %v1149_v32, %v1783_v3 }
 0x940   : >> { %1157 = vadd.xlane.f32.xlu0 %v1152_v31  ;;  %1155 = vadd.xlane.f32.xlu1 %v1151_v16  ;;  %v1483_v31 = vld [vmem:[%s1888_s17 + $0x7] sm:$0x1]  ;;  %v1238_v16 = vstv %s2135_s2 }
 0x944   : >> { %1159 = vadd.xlane.f32.xlu0 %v1153_v33  ;;  %1161 = vadd.xlane.f32.xlu1 %v1154_v52  ;;  %v1231_v33 = vstv %s1230_s27 }
 0x945   : >> { %vm1232_vm7 = vcmp.eq.s32.totalorder %v1231_v33, 1 }
 0x9cd   : >> { %v1158_v17 = vpop.xlane.xlu0 %1157  ;;  %v1156_v54 = vpop.xlane.xlu1 %1155 }
 0x9ce   : >> { %v1164_v55 = vadd.f32 %v1158_v17, %v1787_v5  ;;  %v1163_v20 = vadd.f32 %v1156_v54, %v1785_v4 }
 0x9d0   : >> { %v1172_v41 = vmin.f32 %v1164_v55, 0.0  ;;  %v1171_v57 = vmin.f32 %v1163_v20, 0.0  ;;  %vm1168_vm3 = vcmp.gt.f32.partialorder %v1164_v55, 0.0  ;;  %vm1167_vm4 = vcmp.gt.f32.partialorder %v1163_v20, 0.0 }
 0x9d1   : >> { %v1160_v58 = vpop.xlane.xlu0 %1159  ;;  %v1162_v59 = vpop.xlane.xlu1 %1161 }
 0x9d2   : >> { %v1177_v60 = vmul.f32 1.442695, %v1172_v41  ;;  %v1175_v45 = vmul.f32 1.442695, %v1171_v57  ;;  %v1165_v61 = vadd.f32 %v1160_v58, %v1795_v6  ;;  %v1166_v62 = vadd.f32 %v1162_v59, %v1797_v7 }
 0x9d4   : >> { %1593 = vpow2.f32 %v1177_v60  ;;  %v1173_v63 = vmin.f32 %v1165_v61, 0.0  ;;  %v1174_v13 = vmin.f32 %v1166_v62, 0.0  ;;  %vm1169_vm5 = vcmp.gt.f32.partialorder %v1165_v61, 0.0 }
 0x9d5   : >> { %1595 = vpow2.f32 %v1175_v45  ;;  %vm1170_vm6 = vcmp.gt.f32.partialorder %v1166_v62, 0.0 }
 0x9d6   : >> { %v1179_v15 = vmul.f32 1.442695, %v1173_v63  ;;  %v1181_v18 = vmul.f32 1.442695, %v1174_v13 }
 0x9d8   : >> { %1597 = vpow2.f32 %v1179_v15 }
 0x9d9   : >> { %1599 = vpow2.f32 %v1181_v18 }
 0x9de   : >> { %v1594_v19 = vpop.eup %1593 }
 0x9df   : >> { %v1596_v21 = vpop.eup %1595  ;;  %v1479_v22 = vadd.f32 -1.0, %v1594_v19 }
 0x9e0   : >> { %v1478_v53 = vadd.f32 -1.0, %v1596_v21 }
 0x9e1   : >> { %v1188_v23 = vsel %vm1168_vm3, %v1164_v55, %v1479_v22 }
 0x9e2   : >> { %v1598_v24 = vpop.eup %1597  ;;  %1198 = vperm.xlu1 %1536, %v1188_v23   ;;  %v1187_v25 = vsel %vm1167_vm4, %v1163_v20, %v1478_v53 }
 0x9e3   : >> { %v1600_v26 = vpop.eup %1599  ;;  %1193 = vperm.xlu0 %1535, %v1187_v25   ;;  %v1480_v27 = vadd.f32 -1.0, %v1598_v24 }
 0x9e4   : >> { %v1481_v29 = vadd.f32 -1.0, %v1600_v26 }
 0x9e5   : >> { %v1189_v34 = vsel %vm1169_vm5, %v1165_v61, %v1480_v27 }
 0x9e6   : >> { %1203 = vperm.xlu1 %1536, %v1189_v34   ;;  %v1190_v35 = vsel %vm1170_vm6, %v1166_v62, %v1481_v29 }
 0x9e7   : >> { %1208 = vperm.xlu0 %1535, %v1190_v35  }
 0xa61   : >> { %v1199_v36 = vpop.permute.xlu1 %1198 }
 0xa62   : >> { %v1194_v49 = vpop.permute.xlu0 %1193  ;;  %v1212_v37 = vmul.f32 %v1199_v36, %v1801_v9 }
 0xa63   : >> { %v1211_v38 = vmul.f32 %v1194_v49, %v1799_v8 }
 0xa65   : >> { %v1204_v14 = vpop.permute.xlu1 %1203  ;;  %v1215_v39 = vadd.f32 %v1212_v37, %v1211_v38 }
 0xa66   : >> { %v1209_v40 = vpop.permute.xlu0 %1208  ;;  %v1213_v42 = vmul.f32 %v1204_v14, %v1803_v10 }
 0xa67   : >> { %v1214_v43 = vmul.f32 %v1209_v40, %v1805_v11 }
 0xa68   : >> { %v1216_v44 = vadd.f32 %v1215_v39, %v1213_v42 }
 0xa6a   : >> { %v1217_v46 = vadd.f32 %v1216_v44, %v1214_v43 }
 0xa6c   : >> { %v1218_v56 = vrot.slane %v1217_v46, 4 }
 0xa6e   : >> { %v1219_v47 = vadd.f32 %v1218_v56, %v1217_v46 }
 0xa70   : >> { %v1220_v48 = vrot.slane %v1219_v47, 2 }
 0xa72   : >> { %v1221_v50 = vadd.f32 %v1220_v48, %v1219_v47 }
 0xa74   : >> { %v1222_v51 = vrot.slane %v1221_v50, 1 }
 0xa76   : >> { %v1223_v32 = vadd.f32 %v1222_v51, %v1221_v50 }
 0xa78   : >> { %v1224_v52 = vadd.f32 %v1223_v32, %v1807_v12 }
 0xa7a   : >> { %v1228_v17 = vsub.f32 %v1224_v52, %v1483_v31  ;;  %v1239_v54 = vmul.f32 %v1238_v16, %v1224_v52 }
 0xa7b   : > { %384 = sbr.rel (!%p1856_p9) target bundleno = 74 (0x4a), region = 195 }
 0xa7c   : >> { %v1229_v55 = vmul.f32 %v1228_v17, %v1228_v17  ;;  %v1240_v14 = vadd.f32 %v1239_v54, %v2053_v28  }
 0xa7e   : >> { %v1233_v20 = vsel %vm1232_vm7, %v1229_v55, 0.0 }
 0xa7f   : >> { %v1234_v41 = vadd.f32 %v1233_v20, %v2058_v30  }
 0xa81   : >> { %v2109_v16 = vmov %v1234_v41  ;;  %v2111_v15 = vmov (%p1856_p9), %v1234_v41 }
 0xa82 PF: > { %v1241_v28 = vlaneseq  ;;  %v1679_v15 = vphi %v1821_v15, %v2111_v15  }
 0xa84   : > { %v1242_v30 = vshrl.u32 %v1241_v28, 7 }
 0xa86   : > { %v1243_v57 = vsub.s32 0, %v1242_v30 }
 0xa88   : > { %v1244_v58 = vrot.slane %v1679_v15, %v1243_v57 }
 0xa8a   : > { %1245 = vst [vmem:[%s1793_s25] sm:$0xff] %v1244_v58 }
 0xa8b PF: > { %s33_s22 = sadd.s32 1, %s1663_s22  }
 0xa8c   : > { %p30_p4 = scmp.ge.s32.totalorder %s33_s22, 4  }
 0xa8e   :  { %32 = sbr.rel (!%p30_p4) target bundleno = 36 (0x24), region = 206 }
 0xa95   :  { %1265 = vsyncmov [#allocation3] }
 0xa98   :  { %s1266_s23 = vpop.sfrf %1265 }
 0xa99   :  { %p1486_p5 = scmp.ne.s32.totalorder %s1266_s23, 0 }
 0xa9b   :  { %1270 = shalt.err (%p1486_p5)  }
 0xa9c   :  { %1272 = vsyncmov [#allocation3 + $0x1] }
 0xa9f   :  { %s1273_s24 = vpop.sfrf %1272 }
 0xaa0   :  { %p1487_p6 = scmp.ne.s32.totalorder %s1273_s24, 0 }
 0xaa2   :  { %1277 = shalt.err (%p1487_p6)  }

</bundles_post_ra>
